<compile_context>
chip_gen: v6e
topology: v6e:2x2x1
jax: 0.10.0
libtpu: 0.0.40
codegen_flags: <defaults>
</compile_context>

<pallas_src>
import math
import functools

import jax
import jax.numpy as jnp
from jax.experimental import pallas as pl
from jax.experimental.pallas import tpu as pltpu

HIDDEN_DIM = 32
NUM_HEADS = 4
HEAD_DIM = HIDDEN_DIM // NUM_HEADS


def _mha_kernel(q_ref, k_ref, v_ref,
                wq_ref, bq_ref, wk_ref, bk_ref, wv_ref, bv_ref, wo_ref, bo_ref,
                out_ref, attn_ref, *, q_len, kv_len, num_heads, head_dim):
    """One grid step == one batch element.

    Refs (per grid step):
      q_ref                : (1, Lq, D) f32
      k_ref / v_ref        : (1, Lk, D) f32
      w*_ref               : (D, D)     bf16, pre-transposed so y = x @ W + b;
                             wq also carries the 1/sqrt(head_dim) scale.
      b*_ref               : (1, D)     f32
      out_ref              : (1, Lq, D) f32
      attn_ref             : (1, H, Lq*Lk) f32  lane-dense slab (wrapper reshapes).
    """
    D = num_heads * head_dim
    f32 = jnp.float32
    bf16 = jnp.bfloat16

    q = q_ref[0].astype(bf16)                       # (Lq, D)
    k = k_ref[0].astype(bf16)                       # (Lk, D)
    v = v_ref[0].astype(bf16)                       # (Lk, D)

    # Projections: bf16 MXU operands, f32 accumulation. wq/bq already carry 1/sqrt(hd).
    Q = jnp.dot(q, wq_ref[...], preferred_element_type=f32) + bq_ref[...]   # (Lq, D)
    K = jnp.dot(k, wk_ref[...], preferred_element_type=f32) + bk_ref[...]   # (Lk, D)
    V = jnp.dot(v, wv_ref[...], preferred_element_type=f32) + bv_ref[...]   # (Lk, D)

    # Head split: (L, D) -> (H, L, hd).  Relayouts done in f32; cast only at the dots.
    Qh = jnp.transpose(Q.reshape(q_len, num_heads, head_dim), (1, 0, 2))
    Kh = jnp.transpose(K.reshape(kv_len, num_heads, head_dim), (1, 0, 2))
    Vh = jnp.transpose(V.reshape(kv_len, num_heads, head_dim), (1, 0, 2))

    # All heads at once: leading-batch einsum, contracting the last (head_dim) axis.
    energy = jnp.einsum("hqd,hkd->hqk", Qh.astype(bf16), Kh.astype(bf16),
                        preferred_element_type=f32)          # (H, Lq, Lk) f32

    # Numerically stable softmax with EXACT normalization (off the MXU critical path).
    m = jnp.max(energy, axis=-1, keepdims=True)
    p = jnp.exp(energy - m)
    s = jnp.sum(p, axis=-1, keepdims=True)
    attn = p / s                                             # (H, Lq, Lk) f32

    # Single lane-dense store of all heads' probabilities (one write per batch elem).
    attn_ref[0] = attn.reshape(num_heads, q_len * kv_len)

    # Context + head concat, fed straight into the output projection (no VMEM scratch).
    ctx = jnp.einsum("hqk,hkd->hqd", attn.astype(bf16), Vh.astype(bf16),
                     preferred_element_type=f32)             # (H, Lq, hd)
    x = jnp.transpose(ctx, (1, 0, 2)).reshape(q_len, D)      # (Lq, D) head concat

    out_ref[0] = (jnp.dot(x.astype(bf16), wo_ref[...], preferred_element_type=f32)
                  + bo_ref[...])


def prepare_params(params, *, num_heads=NUM_HEADS):
    """One-time layout prep (do NOT call per forward):
      - transpose nn.Linear weights (out,in) -> (in,out) so the kernel does y = x @ W + b,
      - fold the 1/sqrt(head_dim) attention scale into the Q projection weight & bias,
      - cast weights to bf16 (MXU operands); biases stay f32 (added post-accumulation)."""
    D = params["wq"].shape[0]
    head_dim = D // num_heads
    inv_scale = jnp.float32(1.0 / math.sqrt(head_dim))
    bf16 = jnp.bfloat16
    return {
        "wqT": (params["wq"].T * inv_scale).astype(bf16),
        "bq": (params["bq"] * inv_scale).reshape(1, D).astype(jnp.float32),
        "wkT": params["wk"].T.astype(bf16), "bk": params["bk"].reshape(1, D),
        "wvT": params["wv"].T.astype(bf16), "bv": params["bv"].reshape(1, D),
        "woT": params["wo"].T.astype(bf16), "bo": params["bo"].reshape(1, D),
    }


@functools.partial(jax.jit, static_argnames=("num_heads",))
def mha_forward(query, key, value, prep, *, num_heads=NUM_HEADS):
    """query/key/value: (B, L, D) f32; prep: output of prepare_params."""
    B, Lq, D = query.shape
    _, Lk, _ = key.shape
    head_dim = D // num_heads

    kernel = functools.partial(_mha_kernel, q_len=Lq, kv_len=Lk,
                               num_heads=num_heads, head_dim=head_dim)

    out, attn_flat = pl.pallas_call(
        kernel,
        out_shape=(
            jax.ShapeDtypeStruct((B, Lq, D), jnp.float32),
            jax.ShapeDtypeStruct((B, num_heads, Lq * Lk), jnp.float32),
        ),
        grid=(B,),
        in_specs=[
            pl.BlockSpec((1, Lq, D), lambda b: (b, 0, 0)),   # query
            pl.BlockSpec((1, Lk, D), lambda b: (b, 0, 0)),   # key
            pl.BlockSpec((1, Lk, D), lambda b: (b, 0, 0)),   # value
            pl.BlockSpec((D, D), lambda b: (0, 0)),          # wqT (bf16, scale folded)
            pl.BlockSpec((1, D), lambda b: (0, 0)),          # bq
            pl.BlockSpec((D, D), lambda b: (0, 0)),          # wkT
            pl.BlockSpec((1, D), lambda b: (0, 0)),          # bk
            pl.BlockSpec((D, D), lambda b: (0, 0)),          # wvT
            pl.BlockSpec((1, D), lambda b: (0, 0)),          # bv
            pl.BlockSpec((D, D), lambda b: (0, 0)),          # woT
            pl.BlockSpec((1, D), lambda b: (0, 0)),          # bo
        ],
        out_specs=(
            pl.BlockSpec((1, Lq, D), lambda b: (b, 0, 0)),
            pl.BlockSpec((1, num_heads, Lq * Lk), lambda b: (b, 0, 0)),
        ),
        compiler_params=pltpu.CompilerParams(
            dimension_semantics=("parallel",),        # 2 TCs on v7x; no-op on v5e/v6e
            vmem_limit_bytes=32 * 1024 * 1024,        # raise v5e's 16 MiB scoped default
        ),
    )(query, key, value,
      prep["wqT"], prep["bq"], prep["wkT"], prep["bk"],
      prep["wvT"], prep["bv"], prep["woT"], prep["bo"])

    # Metadata-only reshape back to the PyTorch (B, H, Lq, Lk) attention layout.
    attn = attn_flat.reshape(B, num_heads, Lq, Lk)
    return out, attn


def _reference(query, key, value, params, *, num_heads=NUM_HEADS):
    """Plain-JAX f32 mirror of the PyTorch forward (for verification)."""
    B, Lq, D = query.shape
    hd = D // num_heads

    def lin(x, w, b):
        return x @ w.T + b

    Q = lin(query, params["wq"], params["bq"]).reshape(B, Lq, num_heads, hd).transpose(0, 2, 1, 3)
    K = lin(key, params["wk"], params["bk"]).reshape(B, -1, num_heads, hd).transpose(0, 2, 1, 3)
    V = lin(value, params["wv"], params["bv"]).reshape(B, -1, num_heads, hd).transpose(0, 2, 1, 3)
    energy = jnp.einsum("bhqd,bhkd->bhqk", Q, K) / jnp.sqrt(jnp.float32(hd))
    attn = jax.nn.softmax(energy, axis=-1)
    x = jnp.einsum("bhqk,bhkd->bhqd", attn, V)
    x = x.transpose(0, 2, 1, 3).reshape(B, Lq, D)
    x = lin(x, params["wo"], params["bo"])
    return x, attn


def init_params(key, hidden_dim):
    """Deterministic init matching nn.Linear shapes: W (out,in), b (out,)."""
    ks = jax.random.split(key, 8)
    bound = 1.0 / math.sqrt(hidden_dim)
    u = lambda k, shape: jax.random.uniform(k, shape, jnp.float32, -bound, bound)
    return {
        "wq": u(ks[0], (hidden_dim, hidden_dim)), "bq": u(ks[1], (hidden_dim,)),
        "wk": u(ks[2], (hidden_dim, hidden_dim)), "bk": u(ks[3], (hidden_dim,)),
        "wv": u(ks[4], (hidden_dim, hidden_dim)), "bv": u(ks[5], (hidden_dim,)),
        "wo": u(ks[6], (hidden_dim, hidden_dim)), "bo": u(ks[7], (hidden_dim,)),
    }


if __name__ == "__main__":
    key = jax.random.PRNGKey(0)
    kq, kk, kv, kp = jax.random.split(key, 4)

    B, L, D = 2, 8, HIDDEN_DIM
    query = jax.random.normal(kq, (B, L, D), jnp.float32)
    key_in = jax.random.normal(kk, (B, L, D), jnp.float32)
    value = jax.random.normal(kv, (B, L, D), jnp.float32)

    params = init_params(kp, D)
    prep = prepare_params(params)          # one-time transpose + scale fold + bf16 cast

    out, attn = mha_forward(query, key_in, value, prep)
    out = jax.block_until_ready(out)
    attn = jax.block_until_ready(attn)

    ref_out, ref_attn = _reference(query, key_in, value, params)
    assert out.shape == (B, L, D) and attn.shape == (B, NUM_HEADS, L, L)
    # Tolerance accounts for bf16 MXU operands (f32 accumulation, exact softmax).
    assert jnp.allclose(out, ref_out, atol=1e-2, rtol=1e-2)
    assert jnp.allclose(attn, ref_attn, atol=1e-2, rtol=1e-2)

    print("KERNEL_OK")
</pallas_src>

<mosaic_0001>
module attributes {stable_mosaic.version = 11 : i64} {
  func.func @_mha_kernel(%arg0: i32, %arg1: memref<1x8x32xf32, #tpu.memory_space<vmem>>, %arg2: memref<1x8x32xf32, #tpu.memory_space<vmem>>, %arg3: memref<1x8x32xf32, #tpu.memory_space<vmem>>, %arg4: memref<32x32xbf16, #tpu.memory_space<vmem>>, %arg5: memref<1x32xf32, #tpu.memory_space<vmem>>, %arg6: memref<32x32xbf16, #tpu.memory_space<vmem>>, %arg7: memref<1x32xf32, #tpu.memory_space<vmem>>, %arg8: memref<32x32xbf16, #tpu.memory_space<vmem>>, %arg9: memref<1x32xf32, #tpu.memory_space<vmem>>, %arg10: memref<32x32xbf16, #tpu.memory_space<vmem>>, %arg11: memref<1x32xf32, #tpu.memory_space<vmem>>, %arg12: memref<1x8x32xf32, #tpu.memory_space<vmem>>, %arg13: memref<1x4x64xf32, #tpu.memory_space<vmem>>) attributes {dimension_semantics = [#tpu.dimension_semantics<parallel>], iteration_bounds = array<i64: 2>, scalar_prefetch = 0 : i64, scratch_operands = 0 : i64, tpu.core_type = #tpu.core_type<tc>, window_params = [{transform_indices = @transform_0, window_bounds = array<i64: 1, 8, 32>}, {transform_indices = @transform_1, window_bounds = array<i64: 1, 8, 32>}, {transform_indices = @transform_2, window_bounds = array<i64: 1, 8, 32>}, {pipeline_mode = #tpu.pipeline_mode<synchronous>, transform_indices = @transform_3, window_bounds = array<i64: 32, 32>}, {pipeline_mode = #tpu.pipeline_mode<synchronous>, transform_indices = @transform_4, window_bounds = array<i64: 1, 32>}, {pipeline_mode = #tpu.pipeline_mode<synchronous>, transform_indices = @transform_5, window_bounds = array<i64: 32, 32>}, {pipeline_mode = #tpu.pipeline_mode<synchronous>, transform_indices = @transform_6, window_bounds = array<i64: 1, 32>}, {pipeline_mode = #tpu.pipeline_mode<synchronous>, transform_indices = @transform_7, window_bounds = array<i64: 32, 32>}, {pipeline_mode = #tpu.pipeline_mode<synchronous>, transform_indices = @transform_8, window_bounds = array<i64: 1, 32>}, {pipeline_mode = #tpu.pipeline_mode<synchronous>, transform_indices = @transform_9, window_bounds = array<i64: 32, 32>}, {pipeline_mode = #tpu.pipeline_mode<synchronous>, transform_indices = @transform_10, window_bounds = array<i64: 1, 32>}, {transform_indices = @transform_11, window_bounds = array<i64: 1, 8, 32>}, {transform_indices = @transform_12, window_bounds = array<i64: 1, 4, 64>}]} {
    %c0 = arith.constant 0 : index
    %c0_0 = arith.constant 0 : index
    %c0_1 = arith.constant 0 : index
    %0 = vector.load %arg1[%c0, %c0_0, %c0_1] : memref<1x8x32xf32, #tpu.memory_space<vmem>>, vector<1x8x32xf32>
    %1 = vector.shape_cast %0 : vector<1x8x32xf32> to vector<8x32xf32>
    %2 = arith.truncf %1 : vector<8x32xf32> to vector<8x32xbf16>
    %c0_2 = arith.constant 0 : index
    %c0_3 = arith.constant 0 : index
    %c0_4 = arith.constant 0 : index
    %3 = vector.load %arg2[%c0_2, %c0_3, %c0_4] : memref<1x8x32xf32, #tpu.memory_space<vmem>>, vector<1x8x32xf32>
    %4 = vector.shape_cast %3 : vector<1x8x32xf32> to vector<8x32xf32>
    %5 = arith.truncf %4 : vector<8x32xf32> to vector<8x32xbf16>
    %c0_5 = arith.constant 0 : index
    %c0_6 = arith.constant 0 : index
    %c0_7 = arith.constant 0 : index
    %6 = vector.load %arg3[%c0_5, %c0_6, %c0_7] : memref<1x8x32xf32, #tpu.memory_space<vmem>>, vector<1x8x32xf32>
    %7 = vector.shape_cast %6 : vector<1x8x32xf32> to vector<8x32xf32>
    %8 = arith.truncf %7 : vector<8x32xf32> to vector<8x32xbf16>
    %c0_8 = arith.constant 0 : index
    %c0_9 = arith.constant 0 : index
    %9 = vector.load %arg4[%c0_8, %c0_9] : memref<32x32xbf16, #tpu.memory_space<vmem>>, vector<32x32xbf16>
    %cst = arith.constant dense<0.000000e+00> : vector<8x32xf32>
    %10 = tpu.matmul %2, %9, %cst {dimension_numbers = #tpu.dot_dimension_numbers<[1], [0], [0], [1], [0, 0, 1, 1], [], []>} : vector<8x32xbf16>, vector<32x32xbf16>, vector<8x32xf32> -> vector<8x32xf32>
    %c0_10 = arith.constant 0 : index
    %c0_11 = arith.constant 0 : index
    %11 = vector.load %arg5[%c0_10, %c0_11] : memref<1x32xf32, #tpu.memory_space<vmem>>, vector<1x32xf32>
    %12 = vector.broadcast %11 : vector<1x32xf32> to vector<8x32xf32>
    %13 = arith.addf %10, %12 : vector<8x32xf32>
    %c0_12 = arith.constant 0 : index
    %c0_13 = arith.constant 0 : index
    %14 = vector.load %arg6[%c0_12, %c0_13] : memref<32x32xbf16, #tpu.memory_space<vmem>>, vector<32x32xbf16>
    %cst_14 = arith.constant dense<0.000000e+00> : vector<8x32xf32>
    %15 = tpu.matmul %5, %14, %cst_14 {dimension_numbers = #tpu.dot_dimension_numbers<[1], [0], [0], [1], [0, 0, 1, 1], [], []>} : vector<8x32xbf16>, vector<32x32xbf16>, vector<8x32xf32> -> vector<8x32xf32>
    %c0_15 = arith.constant 0 : index
    %c0_16 = arith.constant 0 : index
    %16 = vector.load %arg7[%c0_15, %c0_16] : memref<1x32xf32, #tpu.memory_space<vmem>>, vector<1x32xf32>
    %17 = vector.broadcast %16 : vector<1x32xf32> to vector<8x32xf32>
    %18 = arith.addf %15, %17 : vector<8x32xf32>
    %c0_17 = arith.constant 0 : index
    %c0_18 = arith.constant 0 : index
    %19 = vector.load %arg8[%c0_17, %c0_18] : memref<32x32xbf16, #tpu.memory_space<vmem>>, vector<32x32xbf16>
    %cst_19 = arith.constant dense<0.000000e+00> : vector<8x32xf32>
    %20 = tpu.matmul %8, %19, %cst_19 {dimension_numbers = #tpu.dot_dimension_numbers<[1], [0], [0], [1], [0, 0, 1, 1], [], []>} : vector<8x32xbf16>, vector<32x32xbf16>, vector<8x32xf32> -> vector<8x32xf32>
    %c0_20 = arith.constant 0 : index
    %c0_21 = arith.constant 0 : index
    %21 = vector.load %arg9[%c0_20, %c0_21] : memref<1x32xf32, #tpu.memory_space<vmem>>, vector<1x32xf32>
    %22 = vector.broadcast %21 : vector<1x32xf32> to vector<8x32xf32>
    %23 = arith.addf %20, %22 : vector<8x32xf32>
    %24 = vector.shape_cast %13 : vector<8x32xf32> to vector<8x4x8xf32>
    %25 = tpu.transpose %24, [1, 0, 2] : vector<8x4x8xf32> -> vector<4x8x8xf32>
    %26 = vector.shape_cast %18 : vector<8x32xf32> to vector<8x4x8xf32>
    %27 = tpu.transpose %26, [1, 0, 2] : vector<8x4x8xf32> -> vector<4x8x8xf32>
    %28 = vector.shape_cast %23 : vector<8x32xf32> to vector<8x4x8xf32>
    %29 = tpu.transpose %28, [1, 0, 2] : vector<8x4x8xf32> -> vector<4x8x8xf32>
    %30 = arith.truncf %25 : vector<4x8x8xf32> to vector<4x8x8xbf16>
    %31 = arith.truncf %27 : vector<4x8x8xf32> to vector<4x8x8xbf16>
    "tpu.trace_start"() <{level = 10 : i32, message = "hqd,hkd->hqk"}> : () -> ()
    %cst_22 = arith.constant dense<0.000000e+00> : vector<4x8x8xf32>
    %32 = tpu.matmul %30, %31, %cst_22 {dimension_numbers = #tpu.dot_dimension_numbers<[2], [2], [1], [1], [0, 0, 0, 1, 1, 1], [0], [0]>} : vector<4x8x8xbf16>, vector<4x8x8xbf16>, vector<4x8x8xf32> -> vector<4x8x8xf32>
    "tpu.trace_stop"() : () -> ()
    %cst_23 = arith.constant dense<0xFF800000> : vector<4x8xf32>
    %33 = vector.multi_reduction <maximumf>, %32, %cst_23 [2] : vector<4x8x8xf32> to vector<4x8xf32>
    %34 = vector.shape_cast %33 : vector<4x8xf32> to vector<4x8x1xf32>
    %35 = vector.broadcast %34 : vector<4x8x1xf32> to vector<4x8x8xf32>
    %36 = arith.subf %32, %35 : vector<4x8x8xf32>
    %37 = math.exp %36 : vector<4x8x8xf32>
    %cst_24 = arith.constant dense<0.000000e+00> : vector<4x8xf32>
    %38 = vector.multi_reduction <add>, %37, %cst_24 [2] : vector<4x8x8xf32> to vector<4x8xf32>
    %39 = vector.shape_cast %38 : vector<4x8xf32> to vector<4x8x1xf32>
    %40 = vector.broadcast %39 : vector<4x8x1xf32> to vector<4x8x8xf32>
    %41 = arith.divf %37, %40 : vector<4x8x8xf32>
    %42 = vector.shape_cast %41 : vector<4x8x8xf32> to vector<4x64xf32>
    %c0_25 = arith.constant 0 : index
    %c0_26 = arith.constant 0 : index
    %c0_27 = arith.constant 0 : index
    %43 = vector.load %arg13[%c0_25, %c0_26, %c0_27] : memref<1x4x64xf32, #tpu.memory_space<vmem>>, vector<1x4x64xf32>
    %44 = vector.shape_cast %43 : vector<1x4x64xf32> to vector<4x64xf32>
    %45 = vector.shape_cast %42 : vector<4x64xf32> to vector<1x4x64xf32>
    tpu.vector_store %arg13[%c0_25, %c0_26, %c0_27], %45 {strides = array<i32>} : memref<1x4x64xf32, #tpu.memory_space<vmem>>, vector<1x4x64xf32>,
    %46 = arith.truncf %41 : vector<4x8x8xf32> to vector<4x8x8xbf16>
    %47 = arith.truncf %29 : vector<4x8x8xf32> to vector<4x8x8xbf16>
    "tpu.trace_start"() <{level = 10 : i32, message = "hqk,hkd->hqd"}> : () -> ()
    %cst_28 = arith.constant dense<0.000000e+00> : vector<4x8x8xf32>
    %48 = tpu.matmul %46, %47, %cst_28 {dimension_numbers = #tpu.dot_dimension_numbers<[2], [1], [1], [2], [0, 0, 0, 1, 1, 2], [0], [0]>} : vector<4x8x8xbf16>, vector<4x8x8xbf16>, vector<4x8x8xf32> -> vector<4x8x8xf32>
    "tpu.trace_stop"() : () -> ()
    %49 = tpu.transpose %48, [1, 0, 2] : vector<4x8x8xf32> -> vector<8x4x8xf32>
    %50 = vector.shape_cast %49 : vector<8x4x8xf32> to vector<8x32xf32>
    %51 = arith.truncf %50 : vector<8x32xf32> to vector<8x32xbf16>
    %c0_29 = arith.constant 0 : index
    %c0_30 = arith.constant 0 : index
    %52 = vector.load %arg10[%c0_29, %c0_30] : memref<32x32xbf16, #tpu.memory_space<vmem>>, vector<32x32xbf16>
    %cst_31 = arith.constant dense<0.000000e+00> : vector<8x32xf32>
    %53 = tpu.matmul %51, %52, %cst_31 {dimension_numbers = #tpu.dot_dimension_numbers<[1], [0], [0], [1], [0, 0, 1, 1], [], []>} : vector<8x32xbf16>, vector<32x32xbf16>, vector<8x32xf32> -> vector<8x32xf32>
    %c0_32 = arith.constant 0 : index
    %c0_33 = arith.constant 0 : index
    %54 = vector.load %arg11[%c0_32, %c0_33] : memref<1x32xf32, #tpu.memory_space<vmem>>, vector<1x32xf32>
    %55 = vector.broadcast %54 : vector<1x32xf32> to vector<8x32xf32>
    %56 = arith.addf %53, %55 : vector<8x32xf32>
    %c0_34 = arith.constant 0 : index
    %c0_35 = arith.constant 0 : index
    %c0_36 = arith.constant 0 : index
    %57 = vector.load %arg12[%c0_34, %c0_35, %c0_36] : memref<1x8x32xf32, #tpu.memory_space<vmem>>, vector<1x8x32xf32>
    %58 = vector.shape_cast %57 : vector<1x8x32xf32> to vector<8x32xf32>
    %59 = vector.shape_cast %56 : vector<8x32xf32> to vector<1x8x32xf32>
    tpu.vector_store %arg12[%c0_34, %c0_35, %c0_36], %59 {strides = array<i32>} : memref<1x8x32xf32, #tpu.memory_space<vmem>>, vector<1x8x32xf32>,
    return
  }
  func.func @transform_0(%arg0: i32) -> (i32, i32, i32) {
    %c0_i32 = arith.constant 0 : i32
    %c0_i32_0 = arith.constant 0 : i32
    %c0_i32_1 = arith.constant 0 : i32
    return %arg0, %c0_i32, %c0_i32_0 : i32, i32, i32
  }
  func.func @transform_1(%arg0: i32) -> (i32, i32, i32) {
    %c0_i32 = arith.constant 0 : i32
    %c0_i32_0 = arith.constant 0 : i32
    %c0_i32_1 = arith.constant 0 : i32
    return %arg0, %c0_i32, %c0_i32_0 : i32, i32, i32
  }
  func.func @transform_2(%arg0: i32) -> (i32, i32, i32) {
    %c0_i32 = arith.constant 0 : i32
    %c0_i32_0 = arith.constant 0 : i32
    %c0_i32_1 = arith.constant 0 : i32
    return %arg0, %c0_i32, %c0_i32_0 : i32, i32, i32
  }
  func.func @transform_3(%arg0: i32) -> (i32, i32) {
    %c0_i32 = arith.constant 0 : i32
    %c0_i32_0 = arith.constant 0 : i32
    %c0_i32_1 = arith.constant 0 : i32
    return %c0_i32, %c0_i32_0 : i32, i32
  }
  func.func @transform_4(%arg0: i32) -> (i32, i32) {
    %c0_i32 = arith.constant 0 : i32
    %c0_i32_0 = arith.constant 0 : i32
    %c0_i32_1 = arith.constant 0 : i32
    return %c0_i32, %c0_i32_0 : i32, i32
  }
  func.func @transform_5(%arg0: i32) -> (i32, i32) {
    %c0_i32 = arith.constant 0 : i32
    %c0_i32_0 = arith.constant 0 : i32
    %c0_i32_1 = arith.constant 0 : i32
    return %c0_i32, %c0_i32_0 : i32, i32
  }
  func.func @transform_6(%arg0: i32) -> (i32, i32) {
    %c0_i32 = arith.constant 0 : i32
    %c0_i32_0 = arith.constant 0 : i32
    %c0_i32_1 = arith.constant 0 : i32
    return %c0_i32, %c0_i32_0 : i32, i32
  }
  func.func @transform_7(%arg0: i32) -> (i32, i32) {
    %c0_i32 = arith.constant 0 : i32
    %c0_i32_0 = arith.constant 0 : i32
    %c0_i32_1 = arith.constant 0 : i32
    return %c0_i32, %c0_i32_0 : i32, i32
  }
  func.func @transform_8(%arg0: i32) -> (i32, i32) {
    %c0_i32 = arith.constant 0 : i32
    %c0_i32_0 = arith.constant 0 : i32
    %c0_i32_1 = arith.constant 0 : i32
    return %c0_i32, %c0_i32_0 : i32, i32
  }
  func.func @transform_9(%arg0: i32) -> (i32, i32) {
    %c0_i32 = arith.constant 0 : i32
    %c0_i32_0 = arith.constant 0 : i32
    %c0_i32_1 = arith.constant 0 : i32
    return %c0_i32, %c0_i32_0 : i32, i32
  }
  func.func @transform_10(%arg0: i32) -> (i32, i32) {
    %c0_i32 = arith.constant 0 : i32
    %c0_i32_0 = arith.constant 0 : i32
    %c0_i32_1 = arith.constant 0 : i32
    return %c0_i32, %c0_i32_0 : i32, i32
  }
  func.func @transform_11(%arg0: i32) -> (i32, i32, i32) {
    %c0_i32 = arith.constant 0 : i32
    %c0_i32_0 = arith.constant 0 : i32
    %c0_i32_1 = arith.constant 0 : i32
    return %arg0, %c0_i32, %c0_i32_0 : i32, i32, i32
  }
  func.func @transform_12(%arg0: i32) -> (i32, i32, i32) {
    %c0_i32 = arith.constant 0 : i32
    %c0_i32_0 = arith.constant 0 : i32
    %c0_i32_1 = arith.constant 0 : i32
    return %arg0, %c0_i32, %c0_i32_0 : i32, i32, i32
  }
}

</mosaic_0001>

<bundles_post_ra>
// kernel: mha_forward.1
= control target key start
LH: loop header
LB: loop body
LE: loop exit
PB: predicated region body
PF: predicated region fallthrough
CT: control target
= control target key end

     0   :  { %s3555_s0 = inlined_call_operand.hbm [shape: f32[2,8,32], index: 0, kind: input, shape index: {}]   ;;  %s3556_s1 = inlined_call_operand.hbm [shape: f32[2,8,32], index: 1, kind: input, shape index: {}]   ;;  %s3557_s2 = inlined_call_operand.hbm [shape: f32[2,8,32], index: 2, kind: input, shape index: {}]   ;;  %s3558_s3 = inlined_call_operand.vmem [shape: bf16[32,32], index: 3, kind: input, shape index: {}]   ;;  %s3559_s4 = inlined_call_operand.hbm [shape: f32[1,32], index: 4, kind: input, shape index: {}]   ;;  %s3560_s5 = inlined_call_operand.hbm [shape: bf16[32,32], index: 5, kind: input, shape index: {}]   ;;  %s3561_s6 = inlined_call_operand.hbm [shape: f32[1,32], index: 6, kind: input, shape index: {}]   ;;  %s3562_s7 = inlined_call_operand.hbm [shape: bf16[32,32], index: 7, kind: input, shape index: {}]   ;;  %s3563_s8 = inlined_call_operand.hbm [shape: f32[1,32], index: 8, kind: input, shape index: {}]   ;;  %s3564_s9 = inlined_call_operand.hbm [shape: bf16[32,32], index: 9, kind: input, shape index: {}]   ;;  %s3565_s10 = inlined_call_operand.hbm [shape: f32[1,32], index: 10, kind: input, shape index: {}]   ;;  %s3566_s11 = inlined_call_operand.hbm [shape: f32[2,8,32], index: 11, kind: output, shape index: {0}]   ;;  %s3567_s12 = inlined_call_operand.vmem [shape: f32[2,4,64], index: 12, kind: output, shape index: {1}]  }
   0x1   :  { %3586 = sst [smem:[#allocation33_spill]] %s3558_s3 }
   0x2   :  { %3587 = sst [smem:[#allocation34_spill]] %s3559_s4 }
   0x3   :  { %3588 = sst [smem:[#allocation35_spill]] %s3561_s6 }
   0x4   :  { %3589 = sst [smem:[#allocation36_spill]] %s3563_s8 }
   0x5   :  { %3590 = sst [smem:[#allocation37_spill]] %s3566_s11 }
   0x6   :  { %3591 = sst [smem:[#allocation38_spill]] %s3567_s12 }
   0x7   :  { %18 = vsyncpa [#allocation3], 0 }
   0x8   :  { %20 = vsyncpa [#allocation3 + $0x1], 0 }
   0x9   :  { %21 = vsyncpa [#allocation6], 0 }
   0xa   :  { %23 = vsyncpa [#allocation6 + $0x1], 0 }
   0xb   :  { %24 = vsyncpa [#allocation9], 0 }
   0xc   :  { %25 = vsyncpa [#allocation12], 0 }
   0xd   :  { %26 = vsyncpa [#allocation15], 0 }
   0xe   :  { %27 = vsyncpa [#allocation18], 0 }
   0xf   :  { %28 = vsyncpa [#allocation4], 0 }
  0x10   :  { %30 = vsyncpa [#allocation4 + $0x1], 0  ;;  %s3017_s21 = smov 0   ;;  %s3019_s22 = smov 0  }
  0x11   :  { %s3021_s23 = smov 0   ;;  %s3023_s24 = smov 0  }
  0x12 LB: > { %3592 = sst [smem:[#allocation27_spill]] %s2911_s21  ;;  %s2925_s25 = smov [#allocation8]   ;;  %s2923_s24 = sphi %s3023_s24, %s3633_s24   ;;  %s2919_s23 = sphi %s3021_s23, %s3637_s23   ;;  %s2915_s22 = sphi %s3019_s22, %s3636_s22   ;;  %s2911_s21 = sphi %s3017_s21, %s3635_s21  }
  0x13   : > { %3593 = sst [smem:[#allocation28_spill]] %s2923_s24  ;;  %s355_s26 = sshll.u32 %s2925_s25, 4  ;;  %s356_s26 = int_to_ptr.vmem [resolvable:$true] %s355_s26 }
  0x14   : > { %s3038_s27 = sadd.s32 4294967295, %s2923_s24   ;;  %p2234_p0 = scmp.ge.s32.totalorder %s2923_s24, 1 }
  0x15   : > { %p3568_p1 = scmp.eq.s32.totalorder %s3038_s27, 0  ;;  %p339_p2 = scmp.lt.s32.totalorder %s2923_s24, 3 }
  0x16   : > { %s2926_s29 = smov [#allocation11]   ;;  %s2927_s13 = smov [#allocation14]  }
  0x17   : > { %p3043_p3 = pnand %p2234_p0, %p339_p2  ;;  %s379_s30 = sshll.u32 %s2926_s29, 4  ;;  %s380_s30 = int_to_ptr.vmem [resolvable:$true] %s379_s30 }
  0x18   : > { %s403_s14 = sshll.u32 %s2927_s13, 4  ;;  %s2584_s17 = scalar_lea.vmem %s356_s26, 16  ;;  %s3056_s14 = int_to_ptr.vmem [resolvable:$true] %s403_s14 }
  0x19   : > { %s3594_s28 = scalar_select %p3043_p3, 1, 0 }
  0x1a   : > { %p2442_p5 = pneg %p3043_p3  ;;  %p2585_p8 = scmp.ne.s32.totalorder %s356_s26, %s2584_s17 }
  0x1b   : > { %s2591_s18 = scalar_lea.vmem %s356_s26, 32  ;;  %p2592_p11 = scmp.lt.s32.totalorder %s356_s26, %s356_s26 }
  0x1c   : > { %p3052_p6 = pnand %p2442_p5, %p3568_p1  ;;  %p2593_p12 = scmp.lt.s32.totalorder %s2591_s18, %s2584_s17 }
  0x1e   : > { %s3595_s15 = scalar_select %p3052_p6, 1, 0 }
  0x1f   : > { %p3060_p7 = pneg %p3052_p6  ;;  %p2594_p13 = por %p2593_p12, %p2592_p11 }
  0x21   : > { %s3596_s16 = scalar_select %p3060_p7, 1, 0 }
  0x22   : > { %p2587_p9 = pnand %p2585_p8, %p3060_p7 }
  0x24   : > { %p2588_p10 = pneg %p2587_p9 }
  0x26   : > { %p2595_p0 = pnand %p2594_p13, %p2588_p10 }
  0x28   : > { %2598 = shalt.err (!%p2595_p0)
}
  0x29   : > { %s3597_s4 = sld [smem:[#allocation34_spill]]  ;;  %s2610_s25 = scalar_lea.vmem %s380_s30, 16 }
  0x2a   : > { %p2611_p2 = scmp.ne.s32.totalorder %s380_s30, %s2610_s25  ;;  %s2617_s29 = scalar_lea.vmem %s380_s30, 32 }
  0x2b   : > { %p2618_p8 = scmp.lt.s32.totalorder %s380_s30, %s380_s30  ;;  %p2619_p9 = scmp.lt.s32.totalorder %s2617_s29, %s2610_s25 }
  0x2c   : > { %p2613_p5 = pnand %p2611_p2, %p3060_p7 }
  0x2d   : > { %p2620_p1 = por %p2619_p9, %p2618_p8 }
  0x2e   : > { %p2614_p4 = pneg %p2613_p5 }
  0x2f   : > { %2445 = dma.hbm_to_vmem [thread:$0]  (!%p3052_p6), %s3597_s4, 16, %s356_s26, [#allocation9]  }
  0x30   : > { %p2621_p3 = pnand %p2620_p1, %p2614_p4 }
  0x32   : > { %2624 = shalt.err (!%p2621_p3)
}
  0x33   : > { %s3598_s6 = sld [smem:[#allocation35_spill]]  ;;  %s2636_s26 = scalar_lea.vmem %s3056_s14, 16 }
  0x34   : > { %p2637_p10 = scmp.ne.s32.totalorder %s3056_s14, %s2636_s26  ;;  %s2643_s18 = scalar_lea.vmem %s3056_s14, 32 }
  0x35   : > { %p2644_p1 = scmp.lt.s32.totalorder %s3056_s14, %s3056_s14  ;;  %p2645_p3 = scmp.lt.s32.totalorder %s2643_s18, %s2636_s26 }
  0x36   : > { %p2639_p11 = pnand %p2637_p10, %p3060_p7 }
  0x37   : > { %p2646_p4 = por %p2645_p3, %p2644_p1 }
  0x38   : > { %p2640_p12 = pneg %p2639_p11 }
  0x39   : > { %2451 = dma.hbm_to_vmem [thread:$0]  (!%p3052_p6), %s3598_s6, 16, %s380_s30, [#allocation12]  }
  0x3a   : > { %p2647_p13 = pnand %p2646_p4, %p2640_p12 }
  0x3c   : > { %2650 = shalt.err (!%p2647_p13)
}
  0x3d   : > { %s3599_s8 = sld [smem:[#allocation36_spill]]  ;;  %s2233_s30 = sadd.s32 4294967294, %s2923_s24  }
  0x3e   : > { %s3093_s25 = sadd.s32 1, %s2923_s24   ;;  %s43_s29 = sadd.s32 1, %s2919_s23 }
  0x3f   : > { %3600 = sst [smem:[#allocation29_spill]] %s3093_s25  ;;  %s40_s13 = ssub.s32 %s2923_s24, %s3093_s25 }
  0x40   : > { %p50_p0 = scmp.ne.s32.totalorder %s2919_s23, %s2915_s22  ;;  %p41_p2 = scmp.eq.s32.totalorder %s40_s13, 0 }
  0x41   : > { %p51_p5 = scmp.eq.s32.totalorder %s2923_s24, 0  ;;  %p56_p8 = scmp.ne.s32.totalorder %s2915_s22, %s2911_s21 }
  0x42   : > { %p300_p9 = scmp.eq.s32.totalorder %s3038_s27, 1  ;;  %p3602_p11 = scmp.eq.s32.totalorder %s3038_s27, 0 }
  0x43   : > { %2457 = dma.hbm_to_vmem [thread:$0]  (!%p3052_p6), %s3599_s8, 16, %s3056_s14, [#allocation15]  }
  0x44   : > { %s3105_s17 = scalar_select %p41_p2, %s2919_s23, %s43_s29  }
  0x45   : > { %p52_p10 = por %p51_p5, %p50_p0  ;;  %p3109_p12 = por %p3602_p11, %p56_p8 }
  0x46   : > { %3601 = sst [smem:[#allocation30_spill]] %s3105_s17  ;;  %p3113_p1 = por %p300_p9, %p50_p0 }
  0x47   : > { %s3603_s14 = scalar_select %p3109_p12, 1, 0 }
  0x48   : > { %s3604_s26 = scalar_select %p3113_p1, 1, 0 }
  0x49   : > { %p306_p3 = scmp.eq.s32.totalorder %s2233_s30, 1  ;;  %p2485_p4 = scmp.lt.s32.totalorder %s2923_s24, 2 }
  0x4a   : > { %3605 = sst [smem:[#allocation31_spill]] %s3604_s26  ;;  %s3570_s18 = sand.u32 1, %s2919_s23  }
  0x4b   : > { %p3119_p13 = por %p306_p3, %p56_p8  ;;  %s3125_s20 = sshll.u32 %s3570_s18, 3 }
  0x4c   : > { %s3128_s29 = sshll.u32 %s2923_s24, 7  ;;  %p3130_p2 = pnand %p2485_p4, %p52_p10 }
  0x4d   : > { %s3606_s19 = scalar_select %p3119_p13, 1, 0 }
  0x4e   : > { %s456_s4 = sand.u32 1, %s2923_s24   ;;  %s3139_s8 = scalar_lea.hbm %s3556_s1, %s3128_s29 }
  0x4f   : > { %3607 = sst [smem:[#allocation32_spill]] %s3606_s19  ;;  %s460_s18 = scalar_lea.vmem [#allocation5], %s3125_s20 }
  0x50   : > { %s467_s17 = sshll.u32 %s460_s18, 4  ;;  %s3142_s25 = scalar_lea.sflag [#allocation6], %s456_s4  ;;  %s468_s17 = int_to_ptr.vmem [resolvable:$true] %s467_s17 }
  0x51   : > { %s2651_s19 = scalar_lea.hbm %s3139_s8, 128  ;;  %p3148_p5 = pneg %p3130_p2 }
  0x52   : > { %p2652_p0 = scmp.ne.s32.totalorder %s3139_s8, %s2651_s19  ;;  %s2656_s24 = scalar_lea.hbm %s3556_s1, 256 }
  0x53   : > { %p2657_p10 = scmp.lt.s32.totalorder %s3139_s8, %s3556_s1  ;;  %p2658_p11 = scmp.lt.s32.totalorder %s2656_s24, %s2651_s19 }
  0x54   : > { %p2654_p8 = pnand %p3148_p5, %p2652_p0 }
  0x55   : > { %p2659_p3 = por %p2658_p11, %p2657_p10 }
  0x56   : > { %p2655_p9 = pneg %p2654_p8 }
  0x58   : > { %p2660_p4 = pnand %p2659_p3, %p2655_p9 }
  0x5a   : > { %2663 = shalt.err (!%p2660_p4)
}
  0x5b   : > { %s2664_s4 = scalar_lea.vmem %s468_s17, 128  ;;  %s2928_s26 = smov [#allocation5]  }
  0x5c   : > { %p2665_p13 = scmp.ne.s32.totalorder %s468_s17, %s2664_s4  ;;  %s2669_s12 = sshll.u32 %s2928_s26, 4  ;;  %s2670_s12 = int_to_ptr.vmem [resolvable:$false] %s2669_s12 }
  0x5d   : > { %s2671_s3 = scalar_lea.vmem %s2670_s12, 256  ;;  %p2672_p0 = scmp.lt.s32.totalorder %s468_s17, %s2670_s12 }
  0x5e   : > { %p2667_p1 = pnand %p2665_p13, %p3148_p5  ;;  %p2673_p8 = scmp.lt.s32.totalorder %s2671_s3, %s2664_s4 }
  0x60   : > { %p2668_p12 = pneg %p2667_p1  ;;  %p2674_p6 = por %p2673_p8, %p2672_p0 }
  0x62   : > { %p2675_p7 = pnand %p2674_p6, %p2668_p12 }
  0x64   : > { %2678 = shalt.err (!%p2675_p7)
}
  0x65   : > { %2470 = dma.hbm_to_vmem [thread:$0]  (!%p3130_p2), %s3139_s8, 128, %s468_s17, %s3142_s25  }
  0x66   : > { %s2929_s11 = smov [#allocation10]   ;;  %p3610_p13 = scmp.ne.s32.totalorder %s3596_s16, 0 }
  0x67   : > { %s365_s24 = sshll.u32 %s2929_s11, 4  ;;  %s366_s24 = int_to_ptr.vmem [resolvable:$true] %s365_s24 }
  0x68   : > { %s2690_s19 = scalar_lea.vmem %s366_s24, 256  ;;  %p2698_p11 = scmp.lt.s32.totalorder %s366_s24, %s366_s24 }
  0x69   : > { %p2691_p1 = scmp.ne.s32.totalorder %s366_s24, %s2690_s19  ;;  %p2699_p3 = scmp.lt.s32.totalorder %s2690_s19, %s2690_s19 }
  0x6b   : > { %p2693_p9 = pnand %p2691_p1, %p3610_p13  ;;  %p2700_p4 = por %p2699_p3, %p2698_p11 }
  0x6d   : > { %p2694_p10 = pneg %p2693_p9 }
  0x6f   : > { %p2701_p0 = pnand %p2700_p4, %p2694_p10 }
  0x71   : > { %2704 = shalt.err (!%p2701_p0)
}
  0x72   : > { %s2930_s3 = smov 64   ;;  %s2931_s12 = smov 4  }
  0x73   : > { %p3611_p6 = scmp.ne.s32.totalorder %s3595_s15, 0  ;;  %s2932_s26 = smov [#allocation13]  }
  0x74   : > { %s389_s6 = sshll.u32 %s2932_s26, 4  ;;  %s2933_s30 = smov [#allocation16]   ;;  %s390_s6 = int_to_ptr.vmem [resolvable:$true] %s389_s6 }
  0x75   : > { %2448 = dma.hbm_to_vmem [thread:$0]  (!%p3611_p6), %s3560_s5, 256, %s366_s24, [#allocation9], %s2930_s3, %s2930_s3, %s2931_s12  }
  0x76   : > { %s413_s18 = sshll.u32 %s2933_s30, 4  ;;  %s2716_s4 = scalar_lea.vmem %s390_s6, 256  ;;  %s414_s18 = int_to_ptr.vmem [resolvable:$true] %s413_s18 }
  0x77   : > { %p2717_p7 = scmp.ne.s32.totalorder %s390_s6, %s2716_s4  ;;  %p2724_p1 = scmp.lt.s32.totalorder %s390_s6, %s390_s6 }
  0x78   : > { %p2725_p9 = scmp.lt.s32.totalorder %s2716_s4, %s2716_s4 }
  0x79   : > { %p2719_p12 = pnand %p2717_p7, %p3610_p13 }
  0x7a   : > { %p2726_p10 = por %p2725_p9, %p2724_p1 }
  0x7b   : > { %p2720_p8 = pneg %p2719_p12 }
  0x7d   : > { %p2727_p11 = pnand %p2726_p10, %p2720_p8 }
  0x7f   : > { %2730 = shalt.err (!%p2727_p11)
}
  0x80   : > { %2454 = dma.hbm_to_vmem [thread:$0]  (!%p3611_p6), %s3562_s7, 256, %s390_s6, [#allocation12], %s2930_s3, %s2930_s3, %s2931_s12  }
  0x81   : > { %s2742_s19 = scalar_lea.vmem %s414_s18, 256  ;;  %p2750_p7 = scmp.lt.s32.totalorder %s414_s18, %s414_s18 }
  0x82   : > { %p2743_p3 = scmp.ne.s32.totalorder %s414_s18, %s2742_s19  ;;  %p2751_p12 = scmp.lt.s32.totalorder %s2742_s19, %s2742_s19 }
  0x84   : > { %p2745_p4 = pnand %p2743_p3, %p3610_p13  ;;  %p2752_p1 = por %p2751_p12, %p2750_p7 }
  0x86   : > { %p2746_p0 = pneg %p2745_p4 }
  0x88   : > { %p2753_p8 = pnand %p2752_p1, %p2746_p0 }
  0x8a   : > { %2756 = shalt.err (!%p2753_p8)
}
  0x8b   : > { %2460 = dma.hbm_to_vmem [thread:$0]  (!%p3611_p6), %s3564_s9, 256, %s414_s18, [#allocation15], %s2930_s3, %s2930_s3, %s2931_s12  }
  0x8c   : > { %s2934_s26 = smov [#allocation17]   ;;  %s3201_s11 = scalar_lea.hbm %s3555_s0, %s3128_s29 }
  0x8d   : > { %s427_s6 = sshll.u32 %s2934_s26, 4  ;;  %s428_s6 = int_to_ptr.vmem [resolvable:$true] %s427_s6 }
  0x8e   : > { %s2768_s24 = scalar_lea.vmem %s428_s6, 16  ;;  %s2775_s19 = scalar_lea.vmem %s428_s6, 32 }
  0x8f   : > { %p2769_p9 = scmp.ne.s32.totalorder %s428_s6, %s2768_s24  ;;  %p2776_p3 = scmp.lt.s32.totalorder %s428_s6, %s428_s6 }
  0x90   : > { %p2777_p4 = scmp.lt.s32.totalorder %s2775_s19, %s2768_s24 }
  0x91   : > { %p2771_p10 = pnand %p2769_p9, %p3610_p13 }
  0x92   : > { %p2778_p0 = por %p2777_p4, %p2776_p3 }
  0x93   : > { %p2772_p11 = pneg %p2771_p10 }
  0x95   : > { %p2779_p7 = pnand %p2778_p0, %p2772_p11 }
  0x97   : > { %2782 = shalt.err (!%p2779_p7)
}
  0x98   : > { %2463 = dma.hbm_to_vmem [thread:$0]  (!%p3611_p6), %s3565_s10, 16, %s428_s6, [#allocation18]  }
  0x99   : > { %s442_s16 = scalar_lea.vmem [#allocation2], %s3125_s20  ;;  %s3215_s26 = scalar_lea.hbm %s3557_s2, %s3128_s29 }
  0x9a   : > { %s449_s18 = sshll.u32 %s442_s16, 4  ;;  %s3612_s15 = sand.u32 1, %s2919_s23   ;;  %s450_s18 = int_to_ptr.vmem [resolvable:$true] %s449_s18 }
  0x9b   : > { %s439_s30 = scalar_lea.sflag [#allocation3], %s3612_s15  ;;  %s2783_s4 = scalar_lea.hbm %s3201_s11, 128 }
  0x9c   : > { %p2784_p13 = scmp.ne.s32.totalorder %s3201_s11, %s2783_s4  ;;  %s2788_s3 = scalar_lea.hbm %s3555_s0, 256 }
  0x9d   : > { %p2789_p6 = scmp.lt.s32.totalorder %s3201_s11, %s3555_s0  ;;  %p2790_p8 = scmp.lt.s32.totalorder %s2788_s3, %s2783_s4 }
  0x9e   : > { %p2786_p12 = pnand %p2784_p13, %p3148_p5 }
  0x9f   : > { %p2791_p9 = por %p2790_p8, %p2789_p6 }
  0xa0   : > { %p2787_p1 = pneg %p2786_p12 }
  0xa2   : > { %p2792_p10 = pnand %p2791_p9, %p2787_p1 }
  0xa4   : > { %2795 = shalt.err (!%p2792_p10)
}
  0xa5   : > { %s2796_s29 = scalar_lea.vmem %s450_s18, 128  ;;  %s2935_s16 = smov [#allocation2]  }
  0xa6   : > { %p2797_p11 = scmp.ne.s32.totalorder %s450_s18, %s2796_s29  ;;  %s2801_s8 = sshll.u32 %s2935_s16, 4  ;;  %s2802_s8 = int_to_ptr.vmem [resolvable:$false] %s2801_s8 }
  0xa7   : > { %s2803_s17 = scalar_lea.vmem %s2802_s8, 256  ;;  %p2804_p0 = scmp.lt.s32.totalorder %s450_s18, %s2802_s8 }
  0xa8   : > { %p2799_p3 = pnand %p2797_p11, %p3148_p5  ;;  %p2805_p7 = scmp.lt.s32.totalorder %s2803_s17, %s2796_s29 }
  0xaa   : > { %p2800_p4 = pneg %p2799_p3  ;;  %p2806_p13 = por %p2805_p7, %p2804_p0 }
  0xac   : > { %p2807_p12 = pnand %p2806_p13, %p2800_p4 }
  0xae   : > { %2810 = shalt.err (!%p2807_p12)
}
  0xaf   : > { %2467 = dma.hbm_to_vmem [thread:$0]  (!%p3130_p2), %s3201_s11, 128, %s450_s18, %s439_s30  }
  0xb0   : > { %s478_s15 = scalar_lea.vmem [#allocation7], %s3125_s20  ;;  %s2811_s24 = scalar_lea.hbm %s3215_s26, 128 }
  0xb1   : > { %s485_s4 = sshll.u32 %s478_s15, 4  ;;  %p2812_p1 = scmp.ne.s32.totalorder %s3215_s26, %s2811_s24  ;;  %s486_s4 = int_to_ptr.vmem [resolvable:$true] %s485_s4 }
  0xb2   : > { %s2816_s6 = scalar_lea.hbm %s3557_s2, 256  ;;  %p2817_p9 = scmp.lt.s32.totalorder %s3215_s26, %s3557_s2 }
  0xb3   : > { %p2814_p6 = pnand %p2812_p1, %p3148_p5  ;;  %p2818_p10 = scmp.lt.s32.totalorder %s2816_s6, %s2811_s24 }
  0xb5   : > { %p2815_p8 = pneg %p2814_p6  ;;  %p2819_p11 = por %p2818_p10, %p2817_p9 }
  0xb7   : > { %p2820_p3 = pnand %p2819_p11, %p2815_p8 }
  0xb9   : > { %2823 = shalt.err (!%p2820_p3)
}
  0xba   : > { %s2824_s20 = scalar_lea.vmem %s486_s4, 128  ;;  %s2936_s11 = smov [#allocation7]  }
  0xbb   : > { %p2825_p4 = scmp.ne.s32.totalorder %s486_s4, %s2824_s20  ;;  %s2829_s18 = sshll.u32 %s2936_s11, 4  ;;  %s2830_s18 = int_to_ptr.vmem [resolvable:$false] %s2829_s18 }
  0xbc   : > { %s2831_s30 = scalar_lea.vmem %s2830_s18, 256  ;;  %p2832_p13 = scmp.lt.s32.totalorder %s486_s4, %s2830_s18 }
  0xbd   : > { %p2827_p0 = pnand %p2825_p4, %p3148_p5  ;;  %p2833_p12 = scmp.lt.s32.totalorder %s2831_s30, %s2824_s20 }
  0xbf   : > { %p2828_p7 = pneg %p2827_p0  ;;  %p2834_p1 = por %p2833_p12, %p2832_p13 }
  0xc1   : > { %p2835_p6 = pnand %p2834_p1, %p2828_p7 }
  0xc3   : > { %2838 = shalt.err (!%p2835_p6)
}
  0xc4   : > { %2473 = dma.hbm_to_vmem [thread:$0]  (!%p3130_p2), %s3215_s26, 128, %s486_s4, %s3142_s25  }
  0xc5   : > { %p3613_p8 = scmp.ne.s32.totalorder %s3594_s28, 0 }
  0xc6   : > { %s3256_s21 = sand.u32 (!%p3613_p8), 1, %s2915_s22   ;;  %p3614_p5 = scmp.ne.s32.totalorder (!%p3613_p8), %s3603_s14, 0 }
  0xc7   : > { %494 = sbr.rel (%p3613_p8) target bundleno = 1675 (0x68b), region = 64  ;;  %s3259_s16 = sshll.u32 (!%p3613_p8), %s3256_s21, 3 }
  0xc8   : > { %s497_s8 = scalar_lea.sflag (!%p3613_p8), [#allocation3], %s3256_s21  ;;  %s500_s17 = scalar_lea.vmem (!%p3613_p8), [#allocation2], %s3259_s16 }
  0xcc   : > { %2882 = dma.done.wait (%p3614_p5), %s497_s8, 128  }
  0xcd   : > { %2884 = vsyncadd (%p3614_p5), %s497_s8, 4294967168  ;;  %s505_s28 = sand.u32 1, %s3038_s27   ;;  %s509_s13 = scalar_lea.vmem [#allocation5], %s3259_s16 }
  0xce   : > { %s506_s25 = scalar_lea.sflag [#allocation6], %s505_s28 }
  0xcf   : > { %2886 = dma.done.wait (%p3614_p5), %s506_s25, 256  }
  0xd0   : > { %2888 = vsyncadd (%p3614_p5), %s506_s25, 4294967040  ;;  %s518_s26 = scalar_lea.vmem [#allocation7], %s3259_s16  ;;  %p3615_p2 = scmp.eq.s32.totalorder %s3038_s27, 0 }
  0xd2   : > { %2890 = dma.done.wait (%p3615_p2), [#allocation9], 272   ;;  %p3616_p9 = pmov %p3615_p2 }
  0xd3   : > { %p3617_p10 = pmov %p3615_p2 }
  0xd4   : > { %2892 = vsyncadd (%p3616_p9), [#allocation9], 4294967024 }
  0xd5   : > { %2894 = dma.done.wait (%p3617_p10), [#allocation12], 272   ;;  %p3618_p11 = pmov %p3615_p2 }
  0xd6   : > { %p3619_p3 = pmov %p3615_p2 }
  0xd7   : > { %2896 = vsyncadd (%p3618_p11), [#allocation12], 4294967024 }
  0xd8   : > { %2898 = dma.done.wait (%p3619_p3), [#allocation15], 272   ;;  %p3620_p4 = pmov %p3615_p2 }
  0xd9   : > { %p3621_p0 = pmov %p3615_p2 }
  0xda   : > { %2900 = vsyncadd (%p3620_p4), [#allocation15], 4294967024 }
  0xdb   : > { %2902 = dma.done.wait (%p3621_p0), [#allocation18], 16   ;;  %p3622_p7 = pmov %p3621_p0 }
  0xdc   : > { %v2937_v0 = vmov 0.0   ;;  %vm2938_vm0 = vmmov 0   ;;  %v2549_v1 = vld [vmem:[#allocation10 + $0x8] sm:$0xff]   ;;  %s3623_s4 = sld [smem:[#allocation33_spill]]  ;;  %v2551_v3 = vld [vmem:[#allocation10] sm:$0xff]   ;;  %vm635_vm1 = vcmask 261120   ;;  %v826_v27 = vlaneseq }
  0xdd   : > { %2904 = vsyncadd (%p3622_p7), [#allocation18], 4294967280  ;;  %2334 = vmatprep.subr.bf16.mxu1 %v2937_v0  ;;  %2326 = vmatprep.subr.bf16.mxu0 %v2937_v0  ;;  %v608_v5 = vld [vmem:[%s509_s13] sm:$0xff]  ;;  %v606_v6 = vld [vmem:[%s500_s17] sm:$0xff]  ;;  %s2939_s3 = smov 104   ;;  %s2940_s6 = smov 120  }
  0xde   : > { %2338 = vmatprep.mubr.msk.bf16.mxu1 %vm2938_vm0, %v2937_v0  ;;  %2330 = vmatprep.mubr.msk.bf16.mxu0 %vm2938_vm0, %v2937_v0  ;;  %v609_v7 = vpack.c.bf16 %v608_v5, %v608_v5  ;;  %v607_v8 = vpack.c.bf16 %v606_v6, %v606_v6  ;;  %v2266_v9 = vld [vmem:[#allocation11] ss:$0 sm:$0xff]  ;;  %v2262_v11 = vld [vmem:[#allocation8] ss:$0 sm:$0xff]  ;;  %v2554_v19 = vld [vmem:[#allocation13] sm:$0xff]   ;;  %s2941_s12 = smov 112  }
  0xdf   : > { %2335 = vmatpush3.bf16.msra.mxu1 %v2549_v1  ;;  %v2553_v12 = vld [vmem:[#allocation13 + $0x8] sm:$0xff]   ;;  %v2942_v25 = vmov 1983009808   ;;  %v2943_v28 = vmov 1934713408   ;;  %v827_v31 = vshrl.u32 %v826_v27, 7 }
  0xe0   : > { %2336 = vmatprep.subr.bf16.mxu1 %v2937_v0  ;;  %v610_v22 = vld [vmem:[%s518_s26] sm:$0xff]  ;;  %v824_v26 = vunpack.c.l.s4 %v2942_v25  ;;  %v856_v29 = vunpack.c.l.s4 %v2943_v28  ;;  %vm1257_vm2 = vcmask 64512   ;;  %vm1607_vm3 = vcmask 1043456   ;;  %s2944_s29 = smov 16   ;;  %s2945_s20 = smov 8  }
  0xe1   : > { %v611_v24 = vpack.c.bf16 %v610_v22, %v610_v22  ;;  %s2946_s11 = smov 24   ;;  %s2947_s18 = smov 32   ;;  %vm1583_vm4 = vcmask 130048   ;;  %vm1585_vm5 = vcmask 195584   ;;  %vm1588_vm6 = vcmask 326656  }
  0xe2   : > { %v2550_v2 = vld [vmem:[%s3623_s4 + $0x8] sm:$0xff]   ;;  %v2552_v4 = vld [vmem:[%s3623_s4] sm:$0xff]   ;;  %v825_v30 = vunpack.c.0.s8 %v824_v26  ;;  %v857_v34 = vunpack.c.0.s8 %v856_v29  ;;  %s2948_s30 = smov 40   ;;  %s2949_s8 = smov 48   ;;  %vm1590_vm7 = vcmask 392192   ;;  %vm1592_vm8 = vcmask 457728  }
  0xe3   : > { %2327 = vmatpush3.bf16.msra.mxu0 %v2550_v2  ;;  %2337 = vmatpush3.bf16.msra.mxu1 %v2551_v3  ;;  %s2950_s17 = smov 56   ;;  %p601_p13 = scmp.lt.s32.totalorder %s3038_s27, 1  ;;  %vm1594_vm9 = vcmask 519168  }
  0xe4   : > { %2328 = vmatprep.subr.bf16.mxu0 %v2937_v0  ;;  %2350 = vmatprep.subr.bf16.mxu1 %v2937_v0  ;;  %v3327_v35 = vsub.s32 %v825_v30, %v827_v31  ;;  %v3329_v42 = vsub.s32 %v857_v34, %v827_v31  ;;  %s3624_s14 = sld [smem:[#allocation38_spill]]  ;;  %s2295_s19 = sshll.u32 %s3038_s27, 7 }
  0xe5   : > { %s602_s28 = scalar_select %p601_p13, %s3038_s27, 1 }
  0xe6   : > { %2339 = vmatmul.mubr.msk.bf16.vlgmr.msra.gmra.mxu1 %vm635_vm1, %v609_v7  ;;  %s3625_s24 = sld [smem:[#allocation31_spill]] }
  0xe7   : > { %2329 = vmatpush3.bf16.msra.mxu0 %v2552_v4  ;;  %2352 = vmatprep.mubr.msk.bf16.mxu1 %vm2938_vm0, %v2937_v0  ;;  %s2261_s25 = sshll.u32 %s602_s28, 2 }
  0xe8   : > { %2342 = vmatprep.subr.bf16.mxu0 %v2937_v0 }
  0xea   : > { %2331 = vmatmul.mubr.msk.bf16.vlgmr.msra.gmra.mxu0 %vm635_vm1, %v607_v8  ;;  %s604_s15 = scalar_lea.vmem %s3624_s14, %s2261_s25 }
  0xeb   : > { %2346 = vmatprep.mubr.msk.bf16.mxu0 %vm2938_vm0, %v2937_v0  ;;  %2343 = vmatpush3.bf16.msra.mxu0 %v2553_v12 }
  0xec   : > { %2344 = vmatprep.subr.bf16.mxu0 %v2937_v0  ;;  %p3627_p1 = scmp.ne.s32.totalorder %s3625_s24, 0 }
  0xef   : > { %2345 = vmatpush3.bf16.msra.mxu0 %v2554_v19 }
  0xf0   : > { %2356 = vmatprep.subr.bf16.mxu0 %v2937_v0 }
  0xf2   : > { %2347 = vmatmul.mubr.msk.bf16.vlgmr.msra.gmra.mxu0 %vm635_vm1, %v611_v24 }
  0xf3   : > { %2358 = vmatprep.mubr.msk.bf16.mxu0 %vm2938_vm0, %v2937_v0 }
 0x1a6   : > { %v739_v10 = vpop.f32.mrf.mxu1 }
 0x1a7   : > { %v740_v13 = vadd.f32 %v2266_v9, %v739_v10 }
 0x1a8   : > { %v2340_v15 = vpop.f32.mrf.mxu1 }
 0x1a9   : > { %964 = vrot.lane.b32.xlu1 %v740_v13, %s2939_s3  ;;  %958 = vrot.lane.b32.xlu0 %v740_v13, %s2940_s6 }
 0x1aa   : > { %v673_v14 = vpop.f32.mrf.mxu0  ;;  %v742_v18 = vpop.f32.mrf.mxu1 }
 0x1ab   : > { %v674_v16 = vadd.f32 %v2262_v11, %v673_v14 }
 0x1ac   : > { %v2332_v17 = vpop.f32.mrf.mxu0  ;;  %v2341_v21 = vpop.f32.mrf.mxu1 }
 0x1ad   : > { %961 = vrot.lane.b32.xlu0 %v740_v13, %s2941_s12  ;;  %812 = vrot.lane.b32.xlu1 %v674_v16, %s2940_s6 }
 0x1ae   : > { %v676_v20 = vpop.f32.mrf.mxu0 }
 0x1b0   : > { %v2333_v23 = vpop.f32.mrf.mxu0 }
 0x1b1   : > { %815 = vrot.lane.b32.xlu0 %v674_v16, %s2941_s12  ;;  %818 = vrot.lane.b32.xlu1 %v674_v16, %s2939_s3 }
 0x21b   : > { %v965_v32 = vpop.permute.xlu1 %964  ;;  %v959_v33 = vpop.permute.xlu0 %958 }
 0x21c   : > { %v983_v36 = vcombine.low %v959_v33, %v965_v32  ;;  %v984_v37 = vcombine.high %v959_v33, %v965_v32 }
 0x21e   : > { %v991_v43 = vrot.slane %v983_v36, %v3327_v35  ;;  %v998_v44 = vrot.slane %v984_v37, %v3327_v35 }
 0x21f   : > { %v962_v38 = vpop.permute.xlu0 %961  ;;  %v813_v39 = vpop.permute.xlu1 %812 }
 0x220   : > { %v967_v40 = vcombine.low %v740_v13, %v962_v38  ;;  %v968_v41 = vcombine.high %v740_v13, %v962_v38 }
 0x222   : > { %v975_v45 = vrot.slane %v967_v40, %v3327_v35  ;;  %v982_v46 = vrot.slane %v968_v41, %v3327_v35 }
 0x223   : > { %v816_v47 = vpop.permute.xlu0 %815  ;;  %v819_v48 = vpop.permute.xlu1 %818 }
 0x224   : > { %v999_v49 = vcombine.low %v975_v45, %v991_v43  ;;  %v1000_v50 = vcombine.high %v975_v45, %v991_v43  ;;  %v1015_v51 = vcombine.low %v982_v46, %v998_v44  ;;  %v1016_v52 = vcombine.high %v982_v46, %v998_v44 }
 0x225   : > { %v821_v53 = vcombine.low %v674_v16, %v816_v47  ;;  %v822_v54 = vcombine.high %v674_v16, %v816_v47  ;;  %v837_v55 = vcombine.low %v813_v39, %v819_v48  ;;  %v838_v56 = vcombine.high %v813_v39, %v819_v48 }
 0x226   : > { %v1007_v57 = vrot.slane %v999_v49, %v3329_v42  ;;  %v1014_v58 = vrot.slane %v1000_v50, %v3329_v42  ;;  %v1023_v59 = vrot.slane %v1015_v51, %v3329_v42  ;;  %v1030_v60 = vrot.slane %v1016_v52, %v3329_v42 }
 0x227   : > { %v829_v61 = vrot.slane %v821_v53, %v3327_v35  ;;  %v836_v62 = vrot.slane %v822_v54, %v3327_v35  ;;  %v845_v63 = vrot.slane %v837_v55, %v3327_v35  ;;  %v852_v1 = vrot.slane %v838_v56, %v3327_v35 }
 0x228   : > { %v1035_v2 = vcombine.low %v1007_v57, %v1014_v58  ;;  %v2276_v3 = vcombine.high %v1007_v57, %v1014_v58  ;;  %v1051_v4 = vcombine.low %v1023_v59, %v1030_v60  ;;  %v2277_v5 = vcombine.high %v1023_v59, %v1030_v60 }
 0x229   : > { %v853_v6 = vcombine.low %v829_v61, %v845_v63  ;;  %v854_v7 = vcombine.high %v829_v61, %v845_v63  ;;  %v869_v8 = vcombine.low %v836_v62, %v852_v1  ;;  %v870_v9 = vcombine.high %v836_v62, %v852_v1  ;;  %v805_v1 = vpop.f32.mrf.mxu0 }
 0x22a   : > { %v1042_v10 = vrot.slane %v1035_v2, %v3327_v35  ;;  %v1050_v11 = vrot.slane %v2276_v3, %v3327_v35  ;;  %v1058_v12 = vrot.slane %v1051_v4, %v3327_v35  ;;  %v1066_v13 = vrot.slane %v2277_v5, %v3327_v35 }
 0x22b   : > { %v861_v14 = vrot.slane %v853_v6, %v3329_v42  ;;  %v868_v15 = vrot.slane %v854_v7, %v3329_v42  ;;  %v877_v16 = vrot.slane %v869_v8, %v3329_v42  ;;  %v884_v17 = vrot.slane %v870_v9, %v3329_v42  ;;  %v2348_v2 = vpop.f32.mrf.mxu0 }
 0x22c   : > { %v1067_v18 = vcombine.low %v1042_v10, %v1050_v11  ;;  %v1083_v19 = vcombine.low %v1058_v12, %v1066_v13  ;;  %v1068_v20 = vcombine.high %v1042_v10, %v1050_v11  ;;  %v1084_v21 = vcombine.high %v1058_v12, %v1066_v13 }
 0x22d   : > { %v889_v22 = vcombine.low %v861_v14, %v868_v15  ;;  %v2274_v23 = vcombine.high %v861_v14, %v868_v15  ;;  %v905_v24 = vcombine.low %v877_v16, %v884_v17  ;;  %v2275_v25 = vcombine.high %v877_v16, %v884_v17  ;;  %v808_v3 = vpop.f32.mrf.mxu0 }
 0x22e   : > { %v1075_v26 = vrot.slane %v1067_v18, %v3329_v42  ;;  %v1091_v27 = vrot.slane %v1083_v19, %v3329_v42  ;;  %v1082_v34 = vrot.slane %v1068_v20, %v3329_v42  ;;  %v1098_v36 = vrot.slane %v1084_v21, %v3329_v42 }
 0x22f   : > { %v896_v28 = vrot.slane %v889_v22, %v3327_v35  ;;  %v904_v29 = vrot.slane %v2274_v23, %v3327_v35  ;;  %v912_v30 = vrot.slane %v905_v24, %v3327_v35  ;;  %v920_v31 = vrot.slane %v2275_v25, %v3327_v35  ;;  %v2349_v4 = vpop.f32.mrf.mxu0  ;;  %v2270_v23 = vld [vmem:[#allocation14] ss:$0 sm:$0xff] }
 0x230   : > { %v1099_v32 = vcombine.low %v1075_v26, %v1091_v27  ;;  %v1100_v33 = vcombine.high %v1075_v26, %v1091_v27  ;;  %v1101_v46 = vcombine.low %v1082_v34, %v1098_v36  ;;  %v1102_v47 = vcombine.high %v1082_v34, %v1098_v36 }
 0x231   : > { %v921_v37 = vcombine.low %v896_v28, %v904_v29  ;;  %v937_v38 = vcombine.low %v912_v30, %v920_v31  ;;  %v922_v48 = vcombine.high %v896_v28, %v904_v29  ;;  %v938_v49 = vcombine.high %v912_v30, %v920_v31 }
 0x232   : > { %v1253_v39 = vpack.c.bf16 %v1099_v32, %v1099_v32  ;;  %v1254_v40 = vpack.c.bf16 %v1100_v33, %v1100_v33  ;;  %v1255_v52 = vpack.c.bf16 %v1101_v46, %v1101_v46  ;;  %v1256_v53 = vpack.c.bf16 %v1102_v47, %v1102_v47 }
 0x233   : > { %v929_v41 = vrot.slane %v921_v37, %v3329_v42  ;;  %v945_v43 = vrot.slane %v937_v38, %v3329_v42  ;;  %v936_v56 = vrot.slane %v922_v48, %v3329_v42  ;;  %v952_v57 = vrot.slane %v938_v49, %v3329_v42 }
 0x234   : > { %v1262_v44 = vsel %vm1257_vm2, %v1253_v39, 0  ;;  %v1308_v45 = vsel %vm1257_vm2, %v1254_v40, 0  ;;  %v1354_v58 = vsel %vm1257_vm2, %v1255_v52, 0  ;;  %v1400_v59 = vsel %vm1257_vm2, %v1256_v53, 0 }
 0x235   : > { %2351 = vmatpush3.bf16.xpose.msra.mxu1 %v1262_v44  ;;  %2357 = vmatpush3.bf16.xpose.msra.mxu0 %v1308_v45  ;;  %v953_v50 = vcombine.low %v929_v41, %v945_v43  ;;  %v954_v51 = vcombine.high %v929_v41, %v945_v43  ;;  %v955_v60 = vcombine.low %v936_v56, %v952_v57 }
 0x236   : > { %2362 = vmatprep.subr.bf16.mxu1 %v2937_v0  ;;  %2368 = vmatprep.subr.bf16.mxu0 %v2937_v0  ;;  %v956_v61 = vcombine.high %v936_v56, %v952_v57  ;;  %v806_v26 = vadd.f32 %v2270_v23, %v805_v1 }
 0x237   : > { %v1249_v54 = vpack.c.bf16 %v953_v50, %v953_v50  ;;  %v1250_v55 = vpack.c.bf16 %v954_v51, %v954_v51  ;;  %v1251_v62 = vpack.c.bf16 %v955_v60, %v955_v60 }
 0x238   : > { %v1252_v63 = vpack.c.bf16 %v956_v61, %v956_v61 }
 0x23c   : > { %2353 = vmatmul.mubr.msk.bf16.vlgmr.msra.gmra.mxu1 %vm1257_vm2, %v1249_v54  ;;  %2359 = vmatmul.mubr.msk.bf16.vlgmr.msra.gmra.mxu0 %vm1257_vm2, %v1250_v55 }
 0x23d   : > { %2363 = vmatpush3.bf16.xpose.msra.mxu1 %v1354_v58  ;;  %2369 = vmatpush3.bf16.xpose.msra.mxu0 %v1400_v59 }
 0x23e   : > { %2364 = vmatprep.mubr.msk.bf16.mxu1 %vm2938_vm0, %v2937_v0  ;;  %2370 = vmatprep.mubr.msk.bf16.mxu0 %vm2938_vm0, %v2937_v0 }
 0x23f   : > { %2374 = vmatprep.subr.bf16.mxu1 %v2937_v0  ;;  %2380 = vmatprep.subr.bf16.mxu0 %v2937_v0 }
 0x244   : > { %2365 = vmatmul.mubr.msk.bf16.vlgmr.msra.gmra.mxu1 %vm1257_vm2, %v1251_v62  ;;  %2371 = vmatmul.mubr.msk.bf16.vlgmr.msra.gmra.mxu0 %vm1257_vm2, %v1252_v63 }
 0x245   : > { %2376 = vmatprep.mubr.msk.bf16.mxu1 %vm2938_vm0, %v2937_v0  ;;  %2382 = vmatprep.mubr.msk.bf16.mxu0 %vm2938_vm0, %v2937_v0 }
 0x2fc   : > { %v1298_v5 = vpop.f32.mrf.mxu1  ;;  %v1344_v6 = vpop.f32.mrf.mxu0 }
 0x2fd   : > { %v1442_v7 = vsel %vm1257_vm2, %v1298_v5, -inf  ;;  %v1445_v8 = vsel %vm1257_vm2, %v1344_v6, -inf }
 0x2fe   : > { %1443 = vmax.xlane.f32.xlu0 %v1442_v7  ;;  %v2354_v9 = vpop.f32.mrf.mxu1  ;;  %1446 = vmax.xlane.f32.xlu1 %v1445_v8  ;;  %v2360_v10 = vpop.f32.mrf.mxu0 }
 0x300   : > { %v1301_v11 = vpop.f32.mrf.mxu1  ;;  %v1347_v12 = vpop.f32.mrf.mxu0 }
 0x302   : > { %v2355_v13 = vpop.f32.mrf.mxu1  ;;  %v2361_v14 = vpop.f32.mrf.mxu0 }
 0x304   : > { %v1390_v15 = vpop.f32.mrf.mxu1  ;;  %v1436_v16 = vpop.f32.mrf.mxu0 }
 0x305   : > { %v1448_v17 = vsel %vm1257_vm2, %v1390_v15, -inf  ;;  %v1451_v22 = vsel %vm1257_vm2, %v1436_v16, -inf }
 0x306   : > { %1449 = vmax.xlane.f32.xlu0 %v1448_v17  ;;  %v2366_v18 = vpop.f32.mrf.mxu1  ;;  %v2372_v19 = vpop.f32.mrf.mxu0 }
 0x308   : > { %v1393_v20 = vpop.f32.mrf.mxu1  ;;  %v1439_v21 = vpop.f32.mrf.mxu0 }
 0x30a   : > { %v2367_v24 = vpop.f32.mrf.mxu1  ;;  %1452 = vmax.xlane.f32.xlu0 %v1451_v22  ;;  %v2373_v25 = vpop.f32.mrf.mxu0 }
 0x30f   : > { %1104 = vrot.lane.b32.xlu1 %v806_v26, %s2940_s6 }
 0x387   : > { %v1444_v27 = vpop.xlane.xlu0 %1443  ;;  %v1447_v28 = vpop.xlane.xlu1 %1446 }
 0x388   : > { %v1454_v29 = vsub.f32 %v1298_v5, %v1444_v27  ;;  %v1455_v30 = vsub.f32 %v1344_v6, %v1447_v28 }
 0x38a   : > { %v1458_v31 = vmul.f32 1.442695, %v1454_v29  ;;  %v1460_v32 = vmul.f32 1.442695, %v1455_v30 }
 0x38b   : > { %v1105_v49 = vpop.permute.xlu1 %1104 }
 0x38c   : > { %2557 = vpow2.f32 %v1458_v31 }
 0x38d   : > { %2559 = vpow2.f32 %v1460_v32 }
 0x38f   : > { %v1450_v38 = vpop.xlane.xlu0 %1449 }
 0x390   : > { %v1456_v40 = vsub.f32 %v1390_v15, %v1450_v38 }
 0x392   : > { %v1462_v43 = vmul.f32 1.442695, %v1456_v40 }
 0x393   : > { %v1453_v39 = vpop.xlane.xlu0 %1452 }
 0x394   : > { %v1457_v41 = vsub.f32 %v1436_v16, %v1453_v39  ;;  %2561 = vpow2.f32 %v1462_v43 }
 0x396   : > { %v1464_v44 = vmul.f32 1.442695, %v1457_v41 }
 0x398   : > { %2563 = vpow2.f32 %v1464_v44 }
 0x399   : > { %v3388_v33 = vpop.eup %2557 }
 0x39a   : > { %v3390_v34 = vpop.eup %2559  ;;  %v1466_v36 = vsel %vm1257_vm2, %v3388_v33, 0.0 }
 0x39b   : > { %1467 = vadd.xlane.f32.xlu1 %v1466_v36  ;;  %v1469_v37 = vsel %vm1257_vm2, %v3390_v34, 0.0 }
 0x39c   : > { %1470 = vadd.xlane.f32.xlu0 %v1469_v37 }
 0x3a1   : > { %v3398_v45 = vpop.eup %2561 }
 0x3a2   : > { %v1472_v47 = vsel %vm1257_vm2, %v3398_v45, 0.0 }
 0x3a5   : > { %v3400_v46 = vpop.eup %2563 }
 0x3a6   : > { %v1475_v48 = vsel %vm1257_vm2, %v3400_v46, 0.0 }
 0x3ac   : > { %1110 = vrot.lane.b32.xlu1 %v806_v26, %s2939_s3  ;;  %s594_s3 = scalar_lea.vmem [#allocation19], %s3259_s16  ;;  %s2951_s16 = smov [#allocation19]  }
 0x3ad   : > { %s2026_s6 = sshll.u32 %s594_s3, 4  ;;  %s3513_s6 = int_to_ptr.vmem [resolvable:$true] %s2026_s6 }
 0x3ae   : > { %s2839_s27 = scalar_lea.vmem %s3513_s6, 128 }
 0x3af   : > { %p2840_p12 = scmp.ne.s32.totalorder %s3513_s6, %s2839_s27 }
 0x3b1   : > { %p2841_p6 = pnand %p2840_p12, %p3627_p1 }
 0x3b2   : > { %1107 = vrot.lane.b32.xlu0 %v806_v26, %s2941_s12 }
 0x3b3   : > { %p2842_p8 = pneg %p2841_p6 }
 0x3d0   : > { %1473 = vadd.xlane.f32.xlu1 %v1472_v47 }
 0x3d1   : > { %1476 = vadd.xlane.f32.xlu0 %v1475_v48 }
 0x424   : > { %v1468_v50 = vpop.xlane.xlu1 %1467 }
 0x425   : > { %v1471_v51 = vpop.xlane.xlu0 %1470  ;;  %2565 = vrcp.f32 %v1468_v50 }
 0x426   : > { %2567 = vrcp.f32 %v1471_v51 }
 0x428   : > { %v1111_v52 = vpop.permute.xlu1 %1110 }
 0x429   : > { %v1129_v53 = vcombine.low %v1105_v49, %v1111_v52  ;;  %v1130_v54 = vcombine.high %v1105_v49, %v1111_v52  ;;  %v1108_v55 = vpop.permute.xlu0 %1107 }
 0x42a   : > { %v1113_v56 = vcombine.low %v806_v26, %v1108_v55  ;;  %v1114_v57 = vcombine.high %v806_v26, %v1108_v55 }
 0x42b   : > { %v1137_v58 = vrot.slane %v1129_v53, %v3327_v35  ;;  %v1144_v59 = vrot.slane %v1130_v54, %v3327_v35 }
 0x42c   : > { %v1121_v60 = vrot.slane %v1113_v56, %v3327_v35  ;;  %v1128_v61 = vrot.slane %v1114_v57, %v3327_v35 }
 0x42e   : > { %v1145_v62 = vcombine.low %v1121_v60, %v1137_v58  ;;  %v1146_v63 = vcombine.high %v1121_v60, %v1137_v58  ;;  %v1161_v1 = vcombine.low %v1128_v61, %v1144_v59  ;;  %v1162_v2 = vcombine.high %v1128_v61, %v1144_v59 }
 0x430   : > { %v1153_v3 = vrot.slane %v1145_v62, %v3329_v42  ;;  %v1160_v4 = vrot.slane %v1146_v63, %v3329_v42  ;;  %v1169_v5 = vrot.slane %v1161_v1, %v3329_v42  ;;  %v1176_v6 = vrot.slane %v1162_v2, %v3329_v42 }
 0x432   : > { %v1181_v7 = vcombine.low %v1153_v3, %v1160_v4  ;;  %v2278_v8 = vcombine.high %v1153_v3, %v1160_v4  ;;  %v1197_v9 = vcombine.low %v1169_v5, %v1176_v6  ;;  %v2279_v10 = vcombine.high %v1169_v5, %v1176_v6  ;;  %v2566_v21 = vpop.eup %2565 }
 0x433   : > { %v2568_v24 = vpop.eup %2567  ;;  %v1479_v29 = vmul.f32 %v2566_v21, %v3388_v33 }
 0x434   : > { %v1188_v11 = vrot.slane %v1181_v7, %v3327_v35  ;;  %v1196_v12 = vrot.slane %v2278_v8, %v3327_v35  ;;  %v1204_v13 = vrot.slane %v1197_v9, %v3327_v35  ;;  %v1212_v14 = vrot.slane %v2279_v10, %v3327_v35 }
 0x435   : > { %v1481_v30 = vmul.f32 %v2568_v24, %v3390_v34  ;;  %v1596_v40 = vpack.c.bf16 %v1479_v29, %v1479_v29 }
 0x436   : > { %v1213_v15 = vcombine.low %v1188_v11, %v1196_v12  ;;  %v1214_v16 = vcombine.high %v1188_v11, %v1196_v12  ;;  %v1229_v17 = vcombine.low %v1204_v13, %v1212_v14  ;;  %v1230_v18 = vcombine.high %v1204_v13, %v1212_v14 }
 0x437   : > { %v1597_v41 = vpack.c.bf16 %v1481_v30, %v1481_v30 }
 0x438   : > { %v1221_v19 = vrot.slane %v1213_v15, %v3329_v42  ;;  %v1228_v20 = vrot.slane %v1214_v16, %v3329_v42  ;;  %v1237_v22 = vrot.slane %v1229_v17, %v3329_v42  ;;  %v1244_v23 = vrot.slane %v1230_v18, %v3329_v42 }
 0x43a   : > { %v1245_v25 = vcombine.low %v1221_v19, %v1237_v22  ;;  %v1246_v26 = vcombine.high %v1221_v19, %v1237_v22  ;;  %v1247_v27 = vcombine.low %v1228_v20, %v1244_v23  ;;  %v1248_v28 = vcombine.high %v1228_v20, %v1244_v23 }
 0x43c   : > { %v1600_v31 = vpack.c.bf16 %v1245_v25, %v1245_v25  ;;  %v1601_v32 = vpack.c.bf16 %v1246_v26, %v1246_v26  ;;  %v1602_v38 = vpack.c.bf16 %v1247_v27, %v1247_v27  ;;  %v1603_v39 = vpack.c.bf16 %v1248_v28, %v1248_v28  ;;  %v2555_v27 = vld [vmem:[#allocation16 + $0x8] sm:$0xff]  }
 0x43e   : > { %v1609_v36 = vsel %vm1607_vm3, %v1600_v31, 0  ;;  %v1655_v37 = vsel %vm1607_vm3, %v1601_v32, 0  ;;  %v1701_v33 = vsel %vm1607_vm3, %v1602_v38, 0  ;;  %v1747_v34 = vsel %vm1607_vm3, %v1603_v39, 0 }
 0x43f   : > { %2375 = vmatpush3.bf16.msra.mxu1 %v1609_v36  ;;  %2381 = vmatpush3.bf16.msra.mxu0 %v1655_v37 }
 0x440   : > { %2386 = vmatprep.subr.bf16.mxu1 %v2937_v0  ;;  %2392 = vmatprep.subr.bf16.mxu0 %v2937_v0 }
 0x442   : > { %2377 = vmatmul.mubr.msk.bf16.vlgmr.msra.gmra.mxu1 %vm1257_vm2, %v1596_v40  ;;  %2383 = vmatmul.mubr.msk.bf16.vlgmr.msra.gmra.mxu0 %vm1257_vm2, %v1597_v41  ;;  %v2556_v40 = vld [vmem:[#allocation16] sm:$0xff]  }
 0x443   : > { %2387 = vmatpush3.bf16.msra.mxu1 %v1701_v33  ;;  %2393 = vmatpush3.bf16.msra.mxu0 %v1747_v34 }
 0x444   : > { %2388 = vmatprep.mubr.msk.bf16.mxu1 %vm2938_vm0, %v2937_v0  ;;  %2394 = vmatprep.mubr.msk.bf16.mxu0 %vm2938_vm0, %v2937_v0 }
 0x445   : > { %2398 = vmatprep.subr.bf16.mxu1 %v2937_v0 }
 0x459   : > { %v1474_v43 = vpop.xlane.xlu1 %1473 }
 0x45a   : > { %2569 = vrcp.f32 %v1474_v43  ;;  %v1477_v44 = vpop.xlane.xlu0 %1476 }
 0x45b   : > { %2571 = vrcp.f32 %v1477_v44 }
 0x467   : > { %v2570_v47 = vpop.eup %2569 }
 0x468   : > { %v2572_v48 = vpop.eup %2571  ;;  %v1483_v49 = vmul.f32 %v2570_v47, %v3398_v45 }
 0x469   : > { %v1485_v50 = vmul.f32 %v2572_v48, %v3400_v46 }
 0x46a   : > { %v1598_v51 = vpack.c.bf16 %v1483_v49, %v1483_v49  ;;  %v1486_v52 = vcombine.low %v1479_v29, %v1483_v49  ;;  %v1487_v53 = vcombine.high %v1479_v29, %v1483_v49 }
 0x46b   : > { %v1599_v54 = vpack.c.bf16 %v1485_v50, %v1485_v50  ;;  %v1502_v55 = vcombine.low %v1481_v30, %v1485_v50  ;;  %v1503_v56 = vcombine.high %v1481_v30, %v1485_v50 }
 0x46c   : > { %2389 = vmatmul.mubr.msk.bf16.vlgmr.msra.gmra.mxu1 %vm1257_vm2, %v1598_v51  ;;  %v3441_v57 = vrot.slane %v1486_v52, %v3327_v35  ;;  %v3444_v58 = vrot.slane %v1487_v53, %v3327_v35 }
 0x46d   : > { %2395 = vmatmul.mubr.msk.bf16.vlgmr.msra.gmra.mxu0 %vm1257_vm2, %v1599_v54  ;;  %v3448_v45 = vrot.slane %v1502_v55, %v3327_v35  ;;  %v3451_v46 = vrot.slane %v1503_v56, %v3327_v35  ;;  %2402 = vmatprep.mubr.msk.bf16.mxu1 %vm2938_vm0, %v2937_v0 }
 0x46e   : > { %2399 = vmatpush3.bf16.msra.mxu1 %v2555_v27 }
 0x46f   : > { %v1518_v59 = vcombine.low %v3441_v57, %v3448_v45  ;;  %v1519_v60 = vcombine.high %v3441_v57, %v3448_v45  ;;  %v1534_v61 = vcombine.low %v3444_v58, %v3451_v46  ;;  %v1535_v62 = vcombine.high %v3444_v58, %v3451_v46  ;;  %2400 = vmatprep.subr.bf16.mxu1 %v2937_v0 }
 0x471   : > { %v1526_v56 = vrot.slane %v1518_v59, %v3329_v42  ;;  %v1542_v59 = vrot.slane %v1534_v61, %v3329_v42  ;;  %v1549_v57 = vrot.slane %v1535_v62, %v3329_v42 }
 0x472   : > { %2401 = vmatpush3.bf16.msra.mxu1 %v2556_v40 }
 0x473   : > { %v1553_v45 = vcombine.high %v1549_v57, %v2937_v0 }
 0x502   : > { %v1645_v63 = vpop.f32.mrf.mxu1  ;;  %v1691_v1 = vpop.f32.mrf.mxu0 }
 0x504   : > { %v2378_v2 = vpop.f32.mrf.mxu1  ;;  %v2384_v3 = vpop.f32.mrf.mxu0 }
 0x505   : > { %v1533_v2 = vrot.slane %v1519_v60, %v3329_v42 }
 0x506   : > { %v1648_v4 = vpop.f32.mrf.mxu1  ;;  %v1694_v5 = vpop.f32.mrf.mxu0 }
 0x507   : > { %v1551_v3 = vcombine.high %v1533_v2, %v2937_v0  ;;  %v1552_v4 = vcombine.high %v1542_v59, %v2937_v0 }
 0x508   : > { %v2379_v6 = vpop.f32.mrf.mxu1  ;;  %v2385_v7 = vpop.f32.mrf.mxu0 }
 0x52c   : > { %v1737_v8 = vpop.f32.mrf.mxu1 }
 0x52d   : > { %v1789_v9 = vcombine.low %v1645_v63, %v1737_v8  ;;  %v1790_v10 = vcombine.high %v1645_v63, %v1737_v8  ;;  %v1783_v11 = vpop.f32.mrf.mxu0 }
 0x52e   : > { %v1805_v12 = vcombine.low %v1691_v1, %v1783_v11  ;;  %v1806_v13 = vcombine.high %v1691_v1, %v1783_v11  ;;  %v2390_v14 = vpop.f32.mrf.mxu1  ;;  %v1550_v1 = vcombine.high %v1526_v56, %v2937_v0 }
 0x52f   : > { %v1797_v15 = vrot.slane %v1789_v9, %v3327_v35  ;;  %v1804_v16 = vrot.slane %v1790_v10, %v3327_v35  ;;  %v2396_v17 = vpop.f32.mrf.mxu0 }
 0x530   : > { %v1813_v18 = vrot.slane %v1805_v12, %v3327_v35  ;;  %v1820_v19 = vrot.slane %v1806_v13, %v3327_v35  ;;  %v1740_v20 = vpop.f32.mrf.mxu1 }
 0x531   : > { %v1786_v21 = vpop.f32.mrf.mxu0 }
 0x532   : > { %v1821_v22 = vcombine.low %v1797_v15, %v1813_v18  ;;  %v1822_v23 = vcombine.high %v1797_v15, %v1813_v18  ;;  %v1837_v24 = vcombine.low %v1804_v16, %v1820_v19  ;;  %v1838_v25 = vcombine.high %v1804_v16, %v1820_v19  ;;  %v2391_v26 = vpop.f32.mrf.mxu1  ;;  %v2290_v19 = vld [vmem:[#allocation17] ss:$0 sm:$0xff] }
 0x533   : > { %v2397_v28 = vpop.f32.mrf.mxu0 }
 0x534   : > { %v1829_v29 = vrot.slane %v1821_v22, %v3329_v42  ;;  %v1836_v30 = vrot.slane %v1822_v23, %v3329_v42  ;;  %v1845_v31 = vrot.slane %v1837_v24, %v3329_v42  ;;  %v1852_v32 = vrot.slane %v1838_v25, %v3329_v42 }
 0x536   : > { %v1857_v36 = vcombine.low %v1829_v29, %v1836_v30  ;;  %v2288_v37 = vcombine.high %v1829_v29, %v1836_v30  ;;  %v1873_v38 = vcombine.low %v1845_v31, %v1852_v32  ;;  %v2289_v39 = vcombine.high %v1845_v31, %v1852_v32 }
 0x538   : > { %v1864_v41 = vrot.slane %v1857_v36, %v3327_v35  ;;  %v1872_v33 = vrot.slane %v2288_v37, %v3327_v35  ;;  %v1880_v34 = vrot.slane %v1873_v38, %v3327_v35  ;;  %v1888_v43 = vrot.slane %v2289_v39, %v3327_v35 }
 0x53a   : > { %v1890_v44 = vcombine.high %v1864_v41, %v1872_v33  ;;  %v1906_v47 = vcombine.high %v1880_v34, %v1888_v43  ;;  %v1889_v48 = vcombine.low %v1864_v41, %v1872_v33  ;;  %v1905_v49 = vcombine.low %v1880_v34, %v1888_v43 }
 0x53c   : > { %v1904_v50 = vrot.slane %v1890_v44, %v3329_v42  ;;  %v1920_v51 = vrot.slane %v1906_v47, %v3329_v42  ;;  %v1897_v52 = vrot.slane %v1889_v48, %v3329_v42  ;;  %v1913_v53 = vrot.slane %v1905_v49, %v3329_v42 }
 0x53e   : > { %v1923_v54 = vcombine.low %v1904_v50, %v1920_v51  ;;  %v1922_v55 = vcombine.high %v1897_v52, %v1913_v53  ;;  %v1921_v63 = vcombine.low %v1897_v52, %v1913_v53  ;;  %v1924_v35 = vcombine.high %v1904_v50, %v1920_v51 }
 0x540   : > { %1930 = vrot.lane.b32.xlu1 %v1923_v54, %s2944_s29  ;;  %1926 = vrot.lane.b32.xlu0 %v1922_v55, %s2945_s20 }
 0x544   : > { %1934 = vrot.lane.b32.xlu1 %v1924_v35, %s2946_s11  ;;  %1555 = vrot.lane.b32.xlu0 %v1550_v1, %s2945_s20  ;;  %s3626_s20 = sld [smem:[#allocation37_spill]] }
 0x548   : > { %1559 = vrot.lane.b32.xlu1 %v1533_v2, %s2944_s29  ;;  %1563 = vrot.lane.b32.xlu0 %v1551_v3, %s2946_s11 }
 0x54a   : > { %s3511_s11 = scalar_lea.hbm %s3626_s20, %s2295_s19 }
 0x54c   : > { %1567 = vrot.lane.b32.xlu1 %v1542_v59, %s2947_s18  ;;  %1571 = vrot.lane.b32.xlu0 %v1552_v4, %s2948_s30  ;;  %s2009_s18 = scalar_lea.sflag [#allocation4], %s3256_s21  ;;  %s2843_s30 = sshll.u32 %s2951_s16, 4  ;;  %s2844_s30 = int_to_ptr.vmem [resolvable:$false] %s2843_s30 }
 0x54d   : > { %p2846_p5 = scmp.lt.s32.totalorder %s3513_s6, %s2844_s30 }
 0x550   : > { %1575 = vrot.lane.b32.xlu1 %v1549_v57, %s2949_s8  ;;  %1579 = vrot.lane.b32.xlu0 %v1553_v45, %s2950_s17  ;;  %s2845_s8 = scalar_lea.vmem %s2844_s30, 256 }
 0x551   : > { %p2847_p2 = scmp.lt.s32.totalorder %s2845_s8, %s2839_s27 }
 0x553   : > { %p2848_p9 = por %p2847_p2, %p2846_p5 }
 0x555   : > { %p2849_p10 = pnand %p2848_p9, %p2842_p8 }
 0x5b2   : > { %v1931_v60 = vpop.permute.xlu1 %1930  ;;  %v1927_v61 = vpop.permute.xlu0 %1926 }
 0x5b3   : > { %v1937_v5 = vsel %vm1257_vm2, %v1921_v63, %v1927_v61 }
 0x5b4   : > { %v1938_v42 = vsel %vm1583_vm4, %v1937_v5, %v1931_v60 }
 0x5b6   : > { %v1935_v58 = vpop.permute.xlu1 %1934  ;;  %v1556_v46 = vpop.permute.xlu0 %1555 }
 0x5b7   : > { %v1939_v62 = vsel %vm1585_vm5, %v1938_v42, %v1935_v58  ;;  %v1582_v7 = vsel %vm1257_vm2, %v1526_v56, %v1556_v46 }
 0x5b8   : > { %v1940_v6 = vpack.c.bf16 %v1939_v62, %v1939_v62 }
 0x5ba   : > { %v1560_v0 = vpop.permute.xlu1 %1559  ;;  %v1564_v8 = vpop.permute.xlu0 %1563  ;;  %2403 = vmatmul.mubr.msk.bf16.vlgmr.msra.gmra.mxu1 %vm635_vm1, %v1940_v6 }
 0x5bb   : > { %v1584_v9 = vsel %vm1583_vm4, %v1582_v7, %v1560_v0 }
 0x5bc   : > { %v1586_v10 = vsel %vm1585_vm5, %v1584_v9, %v1564_v8 }
 0x5be   : > { %v1568_v11 = vpop.permute.xlu1 %1567  ;;  %v1572_v12 = vpop.permute.xlu0 %1571 }
 0x5bf   : > { %v1587_v13 = vsel %vm635_vm1, %v1586_v10, %v1568_v11 }
 0x5c0   : > { %v1589_v14 = vsel %vm1588_vm6, %v1587_v13, %v1572_v12 }
 0x5c2   : > { %v1576_v15 = vpop.permute.xlu1 %1575  ;;  %v1580_v16 = vpop.permute.xlu0 %1579 }
 0x5c3   : > { %v1591_v17 = vsel %vm1590_vm7, %v1589_v14, %v1576_v15 }
 0x5c4   : > { %v1593_v18 = vsel %vm1592_vm8, %v1591_v17, %v1580_v16 }
 0x5c5   : > { %1595 = vst.msk [vmem:[%s604_s15] sm:$0xf] %vm1594_vm9, %v1593_v18 }
 0x67a   : > { %v2001_v20 = vpop.f32.mrf.mxu1 }
 0x67b   : > { %v2002_v21 = vadd.f32 %v2290_v19, %v2001_v20 }
 0x67c   : > { %v2404_v22 = vpop.f32.mrf.mxu1 }
 0x67d   : > { %2007 = vst.msk [vmem:[%s594_s3] sm:$0xff] %vm635_vm1, %v2002_v21 }
 0x67e   : > { %v2004_v23 = vpop.f32.mrf.mxu1 }
 0x67f   : > { %2852 = shalt.err (!%p2849_p10)
}
 0x680   : > { %s2853_s17 = scalar_lea.hbm %s3511_s11, 128  ;;  %s2857_s25 = scalar_lea.hbm %s3626_s20, 256 }
 0x681   : > { %p2854_p11 = scmp.ne.s32.totalorder %s3511_s11, %s2853_s17  ;;  %p2858_p0 = scmp.lt.s32.totalorder %s3511_s11, %s3626_s20 }
 0x682   : > { %p2859_p7 = scmp.lt.s32.totalorder %s2857_s25, %s2853_s17 }
 0x683   : > { %p2855_p3 = pnand %p2854_p11, %p3627_p1 }
 0x684   : > { %p2860_p13 = por %p2859_p7, %p2858_p0 }
 0x685   : > { %p2856_p4 = pneg %p2855_p3 }
 0x687   : > { %p2861_p12 = pnand %p2860_p13, %p2856_p4 }
 0x689   : > { %2864 = shalt.err (!%p2861_p12)
}
 0x68a   : > { %2440 = dma.vmem_to_hbm [thread:$0]  (%p3627_p1), %s3513_s6, 128, %s3511_s11, %s2009_s18   ;;  %v2405_v24 = vpop.f32.mrf.mxu1 }
 0x68b PF: > { %s3628_s14 = sld [smem:[#allocation27_spill]] }
 0x68c   : > { %s3629_s15 = sld [smem:[#allocation32_spill]] }
 0x68d   : > { %s3630_s19 = sld [smem:[#allocation28_spill]] }
 0x691   : > { %s2041_s3 = sand.u32 1, %s3628_s14  }
 0x692   : > { %p3631_p6 = scmp.ne.s32.totalorder %s3629_s15, 0  ;;  %s2042_s12 = scalar_lea.sflag [#allocation4], %s2041_s3 }
 0x693   : > { %p3632_p8 = scmp.ge.s32.totalorder %s3630_s19, 2 }
 0x695   : > { %p2475_p5 = pnand %p3632_p8, %p3631_p6 }
 0x697   : > { %p2476_p2 = pneg %p2475_p5 }
 0x699   : > { %2906 = dma.done.wait (%p2476_p2), %s2042_s12, 128  }
 0x69a   : > { %2908 = vsyncadd (%p2476_p2), %s2042_s12, 4294967168  ;;  %s3633_s24 = sld [smem:[#allocation29_spill]]  ;;  %s3635_s21 = smov %s2915_s22 }
 0x69b   : > { %s3634_s29 = sld [smem:[#allocation30_spill]]  ;;  %s3636_s22 = smov %s2919_s23 }
 0x6a0   : > { %p33_p9 = scmp.ge.s32.totalorder %s3633_s24, 4  }
 0x6a1   : > { %s3637_s23 = smov %s3634_s29 }
 0x6a2   :  { %35 = sbr.rel (!%p33_p9) target bundleno = 18 (0x12), region = 173 }
 0x6a7   :  { %2054 = vsyncpa [#allocation3], 1 }
 0x6a8   :  { %2056 = vsyncpa [#allocation3 + $0x1], 1 }
 0x6a9   :  { %2057 = vsyncpa [#allocation6], 1 }
 0x6aa   :  { %2059 = vsyncpa [#allocation6 + $0x1], 1 }
 0x6ab   :  { %2060 = vsyncpa [#allocation9], 1 }
 0x6ac   :  { %2061 = vsyncpa [#allocation12], 1 }
 0x6ad   :  { %2062 = vsyncpa [#allocation15], 1 }
 0x6ae   :  { %2063 = vsyncpa [#allocation18], 1 }
 0x6af   :  { %2064 = vsyncpa [#allocation4], 1 }
 0x6b0   :  { %2066 = vsyncpa [#allocation4 + $0x1], 1 }

</bundles_post_ra>
